<compile_context>
chip_gen: v5e
topology: v5e:2x2
jax: 0.10.0
libtpu: 0.0.40
codegen_flags: <defaults>
</compile_context>

<pallas_src>
import math

import jax
import jax.numpy as jnp
import numpy as np
from jax.experimental import pallas as pl
from jax.experimental.pallas import tpu as pltpu  # noqa: F401  (kept for TPU-specific tuning hooks)

_BN_EPS = 1e-5
_GELU_C = math.sqrt(2.0 / math.pi)


def _gelu_tanh(x):
    # tanh-approx GELU (EUP-routed); max abs error vs exact erf-GELU ~3e-3,
    # far inside the test tolerance.
    return 0.5 * x * (1.0 + jnp.tanh(_GELU_C * (x + 0.044715 * x * x * x)))


# ----------------------------- fused kernel ---------------------------------


def encoder_kernel(x_ref,      # (D, N*L) f32   activations, lane-dense
                   aff_ref,    # (4*num_layer+2, N*L) f32  packed BN gamma/beta rows
                   blk_ref,    # (N*L, N*L) f32  block-average matrix (1/(L*D) within a node)
                   w1t_ref,    # (num_layer, d_ff, D) bf16  = W1^T stacked
                   w2t_ref,    # (num_layer, D, d_ff) bf16  = W2^T stacked
                   fb_ref,     # (num_layer, d_ff + D, 1) f32  packed FF bias columns
                   o_ref):     # (D, N*L) f32
    num_layer, d_ff, _ = w1t_ref.shape
    aff = aff_ref[...]                                   # (4*num_layer+2, N*L)

    def bn(x2, c):
        # BatchNorm2d(num_nodes) forward with batch stats, two-pass variance.
        # col_sum @ blk == per-node mean already broadcast to every lane of
        # that node (one tiny MXU op; keeps the VPU slot for the apply).
        blk = blk_ref[...]
        col_sum = jnp.sum(x2, axis=0, keepdims=True)                       # (1, N*L)
        mean = jnp.dot(col_sum, blk, preferred_element_type=jnp.float32)   # (1, N*L)
        d = x2 - mean
        col_ssd = jnp.sum(d * d, axis=0, keepdims=True)
        var = jnp.dot(col_ssd, blk, preferred_element_type=jnp.float32)
        # Affine folded into scale/shift -> 2-op per-element apply.
        scale = aff[c:c + 1, :] * jax.lax.rsqrt(var + _BN_EPS)
        shift = aff[c + 1:c + 2, :] - mean * scale
        return x2 * scale + shift

    x = x_ref[...]                                       # (D, N*L) f32
    for l in range(num_layer):                           # static -> unrolled
        # --- Norm1: BatchNorm2d(num_nodes), per-node batch statistics ---
        h = bn(x, 4 * l)
        # TODO(synk): HeteroGraphConv/GATConvs definitions unavailable -> identity message passing.
        xr = x + h                                       # residual 1 (dropout_1 = identity)

        # --- Norm2 ---
        h2 = bn(xr, 4 * l + 2)

        # --- FeedForward in the transposed layout: z = W1^T @ h2, W2^T @ z ---
        fb = fb_ref[l]                                   # (d_ff + D, 1)
        z = jnp.dot(w1t_ref[l], h2.astype(jnp.bfloat16),
                    preferred_element_type=jnp.float32) + fb[:d_ff, :]     # (d_ff, N*L)
        z = _gelu_tanh(z)                                # ff dropout = identity
        z = jnp.dot(w2t_ref[l], z.astype(jnp.bfloat16),
                    preferred_element_type=jnp.float32) + fb[d_ff:, :]     # (D, N*L)
        x = xr + z                                       # residual 2 (dropout_2 = identity)

    # --- final Norm1 ---
    o_ref[...] = bn(x, 4 * num_layer)


# ----------------------------- wrapper ---------------------------------------


def prepare_params(params, seq_len):
    """One-time (outside jit) packing/casting of the stacked PyTorch-style params."""
    num_layer, dim, d_ff = params["w1"].shape
    num_nodes = params["gamma1"].shape[1]

    # Per-node BN affine rows, pre-broadcast to one value per (node, position) lane.
    rows = []
    for l in range(num_layer):
        rows += [params["gamma1"][l], params["beta1"][l],
                 params["gamma2"][l], params["beta2"][l]]
    rows += [params["final_gamma"], params["final_beta"]]
    aff = jnp.repeat(jnp.stack(rows, axis=0), seq_len, axis=1)          # (4L+2, N*L)

    # Block-averaging matrix: blk[i, j] = 1/(L*D) iff lanes i, j belong to the same node.
    node_id = np.repeat(np.arange(num_nodes), seq_len)                  # (N*L,)
    blk = (node_id[:, None] == node_id[None, :]).astype(np.float32) / float(seq_len * dim)

    # FF weights pre-transposed + pre-cast to bf16 once (f32 accumulation in-kernel).
    w1t = jnp.transpose(params["w1"], (0, 2, 1)).astype(jnp.bfloat16)   # (layers, d_ff, D)
    w2t = jnp.transpose(params["w2"], (0, 2, 1)).astype(jnp.bfloat16)   # (layers, D, d_ff)
    # FF biases packed into one column array.
    fb = jnp.transpose(jnp.concatenate([params["b1"], params["b2"]], axis=-1), (0, 2, 1))

    return {"aff": jnp.asarray(aff, jnp.float32),
            "blk": jnp.asarray(blk, jnp.float32),
            "w1t": w1t, "w2t": w2t,
            "fb": jnp.asarray(fb, jnp.float32)}


@jax.jit
def encoder_forward(x, prepared):
    N, L, D = x.shape

    # Lane-dense layout plumbing lives outside the kernel: (N, L, D) -> (D, N*L).
    x_t = jnp.transpose(x, (2, 0, 1)).reshape(D, N * L)

    out_t = pl.pallas_call(
        encoder_kernel,
        out_shape=jax.ShapeDtypeStruct((D, N * L), jnp.float32),
        # whole-array VMEM operands, single kernel invocation (no grid)
        input_output_aliases={0: 0},      # reuse x_t's buffer for the output
    )(x_t, prepared["aff"], prepared["blk"], prepared["w1t"],
      prepared["w2t"], prepared["fb"])

    return jnp.transpose(out_t.reshape(D, N, L), (1, 2, 0))


# ----------------------------- reference (pure JAX, f32) ---------------------


def _norm_ref(x, gamma, beta):
    m = jnp.mean(x, axis=(1, 2), keepdims=True)
    v = jnp.mean((x - m) ** 2, axis=(1, 2), keepdims=True)
    return (x - m) / jnp.sqrt(v + _BN_EPS) * gamma[:, None, None] + beta[:, None, None]


def _encoder_ref(x, params):
    num_layer = params["w1"].shape[0]
    for l in range(num_layer):
        h = _norm_ref(x, params["gamma1"][l], params["beta1"][l])
        xr = x + h
        h2 = _norm_ref(xr, params["gamma2"][l], params["beta2"][l])
        z = jax.nn.gelu(h2 @ params["w1"][l] + params["b1"][l, 0], approximate=False)
        z = z @ params["w2"][l] + params["b2"][l, 0]
        x = xr + z
    return _norm_ref(x, params["final_gamma"], params["final_beta"])


# ----------------------------- params ----------------------------------------


def init_params(key, num_nodes, dim, d_ff, num_layer):
    ks = jax.random.split(key, 10)
    return {
        "gamma1": 1.0 + 0.1 * jax.random.normal(ks[0], (num_layer, num_nodes), jnp.float32),
        "beta1": 0.1 * jax.random.normal(ks[1], (num_layer, num_nodes), jnp.float32),
        "gamma2": 1.0 + 0.1 * jax.random.normal(ks[2], (num_layer, num_nodes), jnp.float32),
        "beta2": 0.1 * jax.random.normal(ks[3], (num_layer, num_nodes), jnp.float32),
        "w1": jax.random.normal(ks[4], (num_layer, dim, d_ff), jnp.float32) / np.sqrt(dim),
        "b1": 0.01 * jax.random.normal(ks[5], (num_layer, 1, d_ff), jnp.float32),
        "w2": jax.random.normal(ks[6], (num_layer, d_ff, dim), jnp.float32) / np.sqrt(d_ff),
        "b2": 0.01 * jax.random.normal(ks[7], (num_layer, 1, dim), jnp.float32),
        "final_gamma": 1.0 + 0.1 * jax.random.normal(ks[8], (num_nodes,), jnp.float32),
        "final_beta": 0.1 * jax.random.normal(ks[9], (num_nodes,), jnp.float32),
    }


# ----------------------------- main -------------------------------------------


if __name__ == "__main__":
    # num_nodes * seq_len = 128 -> fully lane-dense carried layout.
    num_nodes, seq_len, dim, d_ff, num_layer = 8, 16, 32, 128, 2

    key = jax.random.PRNGKey(0)
    k_x, k_p = jax.random.split(key)
    x_v = jax.random.normal(k_x, (num_nodes, seq_len, dim), jnp.float32)
    params = init_params(k_p, num_nodes, dim, d_ff, num_layer)
    prepared = prepare_params(params, seq_len)   # bf16 cast / packing, once, outside jit

    out = encoder_forward(x_v, prepared)
    out = jax.block_until_ready(out)

    ref = _encoder_ref(x_v, params)
    max_diff = float(jnp.max(jnp.abs(out - ref)))
    assert np.isfinite(max_diff) and max_diff < 5e-2, f"mismatch vs reference: {max_diff}"

    print("KERNEL_OK")
</pallas_src>

<mosaic_0001>
module attributes {stable_mosaic.version = 11 : i64} {
  func.func @encoder_kernel(%arg0: memref<32x128xf32, #tpu.memory_space<vmem>>, %arg1: memref<10x128xf32, #tpu.memory_space<vmem>>, %arg2: memref<128x128xf32, #tpu.memory_space<vmem>>, %arg3: memref<2x128x32xbf16, #tpu.memory_space<vmem>>, %arg4: memref<2x32x128xbf16, #tpu.memory_space<vmem>>, %arg5: memref<2x160x1xf32, #tpu.memory_space<vmem>>, %arg6: memref<32x128xf32, #tpu.memory_space<vmem>>) attributes {dimension_semantics = [], scalar_prefetch = 0 : i64, scratch_operands = 0 : i64, tpu.core_type = #tpu.core_type<tc>} {
    %c0 = arith.constant 0 : index
    %c0_0 = arith.constant 0 : index
    %0 = vector.load %arg1[%c0, %c0_0] : memref<10x128xf32, #tpu.memory_space<vmem>>, vector<10x128xf32>
    %c0_1 = arith.constant 0 : index
    %c0_2 = arith.constant 0 : index
    %1 = vector.load %arg0[%c0_1, %c0_2] : memref<32x128xf32, #tpu.memory_space<vmem>>, vector<32x128xf32>
    %c0_3 = arith.constant 0 : index
    %c0_4 = arith.constant 0 : index
    %2 = vector.load %arg2[%c0_3, %c0_4] : memref<128x128xf32, #tpu.memory_space<vmem>>, vector<128x128xf32>
    %cst = arith.constant dense<0.000000e+00> : vector<128xf32>
    %3 = vector.multi_reduction <add>, %1, %cst [0] : vector<32x128xf32> to vector<128xf32>
    %4 = vector.shape_cast %3 : vector<128xf32> to vector<1x128xf32>
    %cst_5 = arith.constant dense<0.000000e+00> : vector<1x128xf32>
    %5 = tpu.matmul %4, %2, %cst_5 {dimension_numbers = #tpu.dot_dimension_numbers<[1], [0], [0], [1], [0, 0, 1, 1], [], []>} : vector<1x128xf32>, vector<128x128xf32>, vector<1x128xf32> -> vector<1x128xf32>
    %6 = vector.broadcast %5 : vector<1x128xf32> to vector<32x128xf32>
    %7 = arith.subf %1, %6 : vector<32x128xf32>
    %8 = arith.mulf %7, %7 : vector<32x128xf32>
    %cst_6 = arith.constant dense<0.000000e+00> : vector<128xf32>
    %9 = vector.multi_reduction <add>, %8, %cst_6 [0] : vector<32x128xf32> to vector<128xf32>
    %10 = vector.shape_cast %9 : vector<128xf32> to vector<1x128xf32>
    %cst_7 = arith.constant dense<0.000000e+00> : vector<1x128xf32>
    %11 = tpu.matmul %10, %2, %cst_7 {dimension_numbers = #tpu.dot_dimension_numbers<[1], [0], [0], [1], [0, 0, 1, 1], [], []>} : vector<1x128xf32>, vector<128x128xf32>, vector<1x128xf32> -> vector<1x128xf32>
    %12 = vector.extract_strided_slice %0 {offsets = [0, 0], sizes = [1, 128], strides = [1, 1]} : vector<10x128xf32> to vector<1x128xf32>
    %cst_8 = arith.constant 9.99999974E-6 : f32
    %13 = vector.broadcast %cst_8 : f32 to vector<1x128xf32>
    %14 = arith.addf %11, %13 : vector<1x128xf32>
    %15 = math.rsqrt %14 : vector<1x128xf32>
    %16 = arith.mulf %12, %15 : vector<1x128xf32>
    %17 = vector.extract_strided_slice %0 {offsets = [1, 0], sizes = [1, 128], strides = [1, 1]} : vector<10x128xf32> to vector<1x128xf32>
    %18 = arith.mulf %5, %16 : vector<1x128xf32>
    %19 = arith.subf %17, %18 : vector<1x128xf32>
    %20 = vector.broadcast %16 : vector<1x128xf32> to vector<32x128xf32>
    %21 = arith.mulf %1, %20 : vector<32x128xf32>
    %22 = vector.broadcast %19 : vector<1x128xf32> to vector<32x128xf32>
    %23 = arith.addf %21, %22 : vector<32x128xf32>
    %24 = arith.addf %1, %23 : vector<32x128xf32>
    %c0_9 = arith.constant 0 : index
    %c0_10 = arith.constant 0 : index
    %25 = vector.load %arg2[%c0_9, %c0_10] : memref<128x128xf32, #tpu.memory_space<vmem>>, vector<128x128xf32>
    %cst_11 = arith.constant dense<0.000000e+00> : vector<128xf32>
    %26 = vector.multi_reduction <add>, %24, %cst_11 [0] : vector<32x128xf32> to vector<128xf32>
    %27 = vector.shape_cast %26 : vector<128xf32> to vector<1x128xf32>
    %cst_12 = arith.constant dense<0.000000e+00> : vector<1x128xf32>
    %28 = tpu.matmul %27, %25, %cst_12 {dimension_numbers = #tpu.dot_dimension_numbers<[1], [0], [0], [1], [0, 0, 1, 1], [], []>} : vector<1x128xf32>, vector<128x128xf32>, vector<1x128xf32> -> vector<1x128xf32>
    %29 = vector.broadcast %28 : vector<1x128xf32> to vector<32x128xf32>
    %30 = arith.subf %24, %29 : vector<32x128xf32>
    %31 = arith.mulf %30, %30 : vector<32x128xf32>
    %cst_13 = arith.constant dense<0.000000e+00> : vector<128xf32>
    %32 = vector.multi_reduction <add>, %31, %cst_13 [0] : vector<32x128xf32> to vector<128xf32>
    %33 = vector.shape_cast %32 : vector<128xf32> to vector<1x128xf32>
    %cst_14 = arith.constant dense<0.000000e+00> : vector<1x128xf32>
    %34 = tpu.matmul %33, %25, %cst_14 {dimension_numbers = #tpu.dot_dimension_numbers<[1], [0], [0], [1], [0, 0, 1, 1], [], []>} : vector<1x128xf32>, vector<128x128xf32>, vector<1x128xf32> -> vector<1x128xf32>
    %35 = vector.extract_strided_slice %0 {offsets = [2, 0], sizes = [1, 128], strides = [1, 1]} : vector<10x128xf32> to vector<1x128xf32>
    %cst_15 = arith.constant 9.99999974E-6 : f32
    %36 = vector.broadcast %cst_15 : f32 to vector<1x128xf32>
    %37 = arith.addf %34, %36 : vector<1x128xf32>
    %38 = math.rsqrt %37 : vector<1x128xf32>
    %39 = arith.mulf %35, %38 : vector<1x128xf32>
    %40 = vector.extract_strided_slice %0 {offsets = [3, 0], sizes = [1, 128], strides = [1, 1]} : vector<10x128xf32> to vector<1x128xf32>
    %41 = arith.mulf %28, %39 : vector<1x128xf32>
    %42 = arith.subf %40, %41 : vector<1x128xf32>
    %43 = vector.broadcast %39 : vector<1x128xf32> to vector<32x128xf32>
    %44 = arith.mulf %24, %43 : vector<32x128xf32>
    %45 = vector.broadcast %42 : vector<1x128xf32> to vector<32x128xf32>
    %46 = arith.addf %44, %45 : vector<32x128xf32>
    %c0_16 = arith.constant 0 : index
    %c0_17 = arith.constant 0 : index
    %c0_18 = arith.constant 0 : index
    %47 = vector.load %arg5[%c0_16, %c0_17, %c0_18] : memref<2x160x1xf32, #tpu.memory_space<vmem>>, vector<1x160x1xf32>
    %48 = vector.shape_cast %47 : vector<1x160x1xf32> to vector<160x1xf32>
    %c0_19 = arith.constant 0 : index
    %c0_20 = arith.constant 0 : index
    %c0_21 = arith.constant 0 : index
    %49 = vector.load %arg3[%c0_19, %c0_20, %c0_21] : memref<2x128x32xbf16, #tpu.memory_space<vmem>>, vector<1x128x32xbf16>
    %50 = vector.shape_cast %49 : vector<1x128x32xbf16> to vector<128x32xbf16>
    %51 = arith.truncf %46 : vector<32x128xf32> to vector<32x128xbf16>
    %cst_22 = arith.constant dense<0.000000e+00> : vector<128x128xf32>
    %52 = tpu.matmul %50, %51, %cst_22 {dimension_numbers = #tpu.dot_dimension_numbers<[1], [0], [0], [1], [0, 0, 1, 1], [], []>} : vector<128x32xbf16>, vector<32x128xbf16>, vector<128x128xf32> -> vector<128x128xf32>
    %53 = vector.extract_strided_slice %48 {offsets = [0, 0], sizes = [128, 1], strides = [1, 1]} : vector<160x1xf32> to vector<128x1xf32>
    %54 = vector.broadcast %53 : vector<128x1xf32> to vector<128x128xf32>
    %55 = arith.addf %52, %54 : vector<128x128xf32>
    %cst_23 = arith.constant 5.000000e-01 : f32
    %56 = vector.broadcast %cst_23 : f32 to vector<128x128xf32>
    %57 = arith.mulf %56, %55 : vector<128x128xf32>
    %cst_24 = arith.constant 4.471500e-02 : f32
    %58 = vector.broadcast %cst_24 : f32 to vector<128x128xf32>
    %59 = arith.mulf %58, %55 : vector<128x128xf32>
    %60 = arith.mulf %59, %55 : vector<128x128xf32>
    %61 = arith.mulf %60, %55 : vector<128x128xf32>
    %62 = arith.addf %55, %61 : vector<128x128xf32>
    %cst_25 = arith.constant 0.797884583 : f32
    %63 = vector.broadcast %cst_25 : f32 to vector<128x128xf32>
    %64 = arith.mulf %63, %62 : vector<128x128xf32>
    %65 = math.tanh %64 : vector<128x128xf32>
    %cst_26 = arith.constant 1.000000e+00 : f32
    %66 = vector.broadcast %cst_26 : f32 to vector<128x128xf32>
    %67 = arith.addf %66, %65 : vector<128x128xf32>
    %68 = arith.mulf %57, %67 : vector<128x128xf32>
    %c0_27 = arith.constant 0 : index
    %c0_28 = arith.constant 0 : index
    %c0_29 = arith.constant 0 : index
    %69 = vector.load %arg4[%c0_27, %c0_28, %c0_29] : memref<2x32x128xbf16, #tpu.memory_space<vmem>>, vector<1x32x128xbf16>
    %70 = vector.shape_cast %69 : vector<1x32x128xbf16> to vector<32x128xbf16>
    %71 = arith.truncf %68 : vector<128x128xf32> to vector<128x128xbf16>
    %cst_30 = arith.constant dense<0.000000e+00> : vector<32x128xf32>
    %72 = tpu.matmul %70, %71, %cst_30 {dimension_numbers = #tpu.dot_dimension_numbers<[1], [0], [0], [1], [0, 0, 1, 1], [], []>} : vector<32x128xbf16>, vector<128x128xbf16>, vector<32x128xf32> -> vector<32x128xf32>
    %73 = vector.extract_strided_slice %48 {offsets = [128, 0], sizes = [32, 1], strides = [1, 1]} : vector<160x1xf32> to vector<32x1xf32>
    %74 = vector.broadcast %73 : vector<32x1xf32> to vector<32x128xf32>
    %75 = arith.addf %72, %74 : vector<32x128xf32>
    %76 = arith.addf %24, %75 : vector<32x128xf32>
    %c0_31 = arith.constant 0 : index
    %c0_32 = arith.constant 0 : index
    %77 = vector.load %arg2[%c0_31, %c0_32] : memref<128x128xf32, #tpu.memory_space<vmem>>, vector<128x128xf32>
    %cst_33 = arith.constant dense<0.000000e+00> : vector<128xf32>
    %78 = vector.multi_reduction <add>, %76, %cst_33 [0] : vector<32x128xf32> to vector<128xf32>
    %79 = vector.shape_cast %78 : vector<128xf32> to vector<1x128xf32>
    %cst_34 = arith.constant dense<0.000000e+00> : vector<1x128xf32>
    %80 = tpu.matmul %79, %77, %cst_34 {dimension_numbers = #tpu.dot_dimension_numbers<[1], [0], [0], [1], [0, 0, 1, 1], [], []>} : vector<1x128xf32>, vector<128x128xf32>, vector<1x128xf32> -> vector<1x128xf32>
    %81 = vector.broadcast %80 : vector<1x128xf32> to vector<32x128xf32>
    %82 = arith.subf %76, %81 : vector<32x128xf32>
    %83 = arith.mulf %82, %82 : vector<32x128xf32>
    %cst_35 = arith.constant dense<0.000000e+00> : vector<128xf32>
    %84 = vector.multi_reduction <add>, %83, %cst_35 [0] : vector<32x128xf32> to vector<128xf32>
    %85 = vector.shape_cast %84 : vector<128xf32> to vector<1x128xf32>
    %cst_36 = arith.constant dense<0.000000e+00> : vector<1x128xf32>
    %86 = tpu.matmul %85, %77, %cst_36 {dimension_numbers = #tpu.dot_dimension_numbers<[1], [0], [0], [1], [0, 0, 1, 1], [], []>} : vector<1x128xf32>, vector<128x128xf32>, vector<1x128xf32> -> vector<1x128xf32>
    %87 = vector.extract_strided_slice %0 {offsets = [4, 0], sizes = [1, 128], strides = [1, 1]} : vector<10x128xf32> to vector<1x128xf32>
    %cst_37 = arith.constant 9.99999974E-6 : f32
    %88 = vector.broadcast %cst_37 : f32 to vector<1x128xf32>
    %89 = arith.addf %86, %88 : vector<1x128xf32>
    %90 = math.rsqrt %89 : vector<1x128xf32>
    %91 = arith.mulf %87, %90 : vector<1x128xf32>
    %92 = vector.extract_strided_slice %0 {offsets = [5, 0], sizes = [1, 128], strides = [1, 1]} : vector<10x128xf32> to vector<1x128xf32>
    %93 = arith.mulf %80, %91 : vector<1x128xf32>
    %94 = arith.subf %92, %93 : vector<1x128xf32>
    %95 = vector.broadcast %91 : vector<1x128xf32> to vector<32x128xf32>
    %96 = arith.mulf %76, %95 : vector<32x128xf32>
    %97 = vector.broadcast %94 : vector<1x128xf32> to vector<32x128xf32>
    %98 = arith.addf %96, %97 : vector<32x128xf32>
    %99 = arith.addf %76, %98 : vector<32x128xf32>
    %c0_38 = arith.constant 0 : index
    %c0_39 = arith.constant 0 : index
    %100 = vector.load %arg2[%c0_38, %c0_39] : memref<128x128xf32, #tpu.memory_space<vmem>>, vector<128x128xf32>
    %cst_40 = arith.constant dense<0.000000e+00> : vector<128xf32>
    %101 = vector.multi_reduction <add>, %99, %cst_40 [0] : vector<32x128xf32> to vector<128xf32>
    %102 = vector.shape_cast %101 : vector<128xf32> to vector<1x128xf32>
    %cst_41 = arith.constant dense<0.000000e+00> : vector<1x128xf32>
    %103 = tpu.matmul %102, %100, %cst_41 {dimension_numbers = #tpu.dot_dimension_numbers<[1], [0], [0], [1], [0, 0, 1, 1], [], []>} : vector<1x128xf32>, vector<128x128xf32>, vector<1x128xf32> -> vector<1x128xf32>
    %104 = vector.broadcast %103 : vector<1x128xf32> to vector<32x128xf32>
    %105 = arith.subf %99, %104 : vector<32x128xf32>
    %106 = arith.mulf %105, %105 : vector<32x128xf32>
    %cst_42 = arith.constant dense<0.000000e+00> : vector<128xf32>
    %107 = vector.multi_reduction <add>, %106, %cst_42 [0] : vector<32x128xf32> to vector<128xf32>
    %108 = vector.shape_cast %107 : vector<128xf32> to vector<1x128xf32>
    %cst_43 = arith.constant dense<0.000000e+00> : vector<1x128xf32>
    %109 = tpu.matmul %108, %100, %cst_43 {dimension_numbers = #tpu.dot_dimension_numbers<[1], [0], [0], [1], [0, 0, 1, 1], [], []>} : vector<1x128xf32>, vector<128x128xf32>, vector<1x128xf32> -> vector<1x128xf32>
    %110 = vector.extract_strided_slice %0 {offsets = [6, 0], sizes = [1, 128], strides = [1, 1]} : vector<10x128xf32> to vector<1x128xf32>
    %cst_44 = arith.constant 9.99999974E-6 : f32
    %111 = vector.broadcast %cst_44 : f32 to vector<1x128xf32>
    %112 = arith.addf %109, %111 : vector<1x128xf32>
    %113 = math.rsqrt %112 : vector<1x128xf32>
    %114 = arith.mulf %110, %113 : vector<1x128xf32>
    %115 = vector.extract_strided_slice %0 {offsets = [7, 0], sizes = [1, 128], strides = [1, 1]} : vector<10x128xf32> to vector<1x128xf32>
    %116 = arith.mulf %103, %114 : vector<1x128xf32>
    %117 = arith.subf %115, %116 : vector<1x128xf32>
    %118 = vector.broadcast %114 : vector<1x128xf32> to vector<32x128xf32>
    %119 = arith.mulf %99, %118 : vector<32x128xf32>
    %120 = vector.broadcast %117 : vector<1x128xf32> to vector<32x128xf32>
    %121 = arith.addf %119, %120 : vector<32x128xf32>
    %c1 = arith.constant 1 : index
    %c0_45 = arith.constant 0 : index
    %c0_46 = arith.constant 0 : index
    %122 = vector.load %arg5[%c1, %c0_45, %c0_46] : memref<2x160x1xf32, #tpu.memory_space<vmem>>, vector<1x160x1xf32>
    %123 = vector.shape_cast %122 : vector<1x160x1xf32> to vector<160x1xf32>
    %c1_47 = arith.constant 1 : index
    %c0_48 = arith.constant 0 : index
    %c0_49 = arith.constant 0 : index
    %124 = vector.load %arg3[%c1_47, %c0_48, %c0_49] : memref<2x128x32xbf16, #tpu.memory_space<vmem>>, vector<1x128x32xbf16>
    %125 = vector.shape_cast %124 : vector<1x128x32xbf16> to vector<128x32xbf16>
    %126 = arith.truncf %121 : vector<32x128xf32> to vector<32x128xbf16>
    %cst_50 = arith.constant dense<0.000000e+00> : vector<128x128xf32>
    %127 = tpu.matmul %125, %126, %cst_50 {dimension_numbers = #tpu.dot_dimension_numbers<[1], [0], [0], [1], [0, 0, 1, 1], [], []>} : vector<128x32xbf16>, vector<32x128xbf16>, vector<128x128xf32> -> vector<128x128xf32>
    %128 = vector.extract_strided_slice %123 {offsets = [0, 0], sizes = [128, 1], strides = [1, 1]} : vector<160x1xf32> to vector<128x1xf32>
    %129 = vector.broadcast %128 : vector<128x1xf32> to vector<128x128xf32>
    %130 = arith.addf %127, %129 : vector<128x128xf32>
    %cst_51 = arith.constant 5.000000e-01 : f32
    %131 = vector.broadcast %cst_51 : f32 to vector<128x128xf32>
    %132 = arith.mulf %131, %130 : vector<128x128xf32>
    %cst_52 = arith.constant 4.471500e-02 : f32
    %133 = vector.broadcast %cst_52 : f32 to vector<128x128xf32>
    %134 = arith.mulf %133, %130 : vector<128x128xf32>
    %135 = arith.mulf %134, %130 : vector<128x128xf32>
    %136 = arith.mulf %135, %130 : vector<128x128xf32>
    %137 = arith.addf %130, %136 : vector<128x128xf32>
    %cst_53 = arith.constant 0.797884583 : f32
    %138 = vector.broadcast %cst_53 : f32 to vector<128x128xf32>
    %139 = arith.mulf %138, %137 : vector<128x128xf32>
    %140 = math.tanh %139 : vector<128x128xf32>
    %cst_54 = arith.constant 1.000000e+00 : f32
    %141 = vector.broadcast %cst_54 : f32 to vector<128x128xf32>
    %142 = arith.addf %141, %140 : vector<128x128xf32>
    %143 = arith.mulf %132, %142 : vector<128x128xf32>
    %c1_55 = arith.constant 1 : index
    %c0_56 = arith.constant 0 : index
    %c0_57 = arith.constant 0 : index
    %144 = vector.load %arg4[%c1_55, %c0_56, %c0_57] : memref<2x32x128xbf16, #tpu.memory_space<vmem>>, vector<1x32x128xbf16>
    %145 = vector.shape_cast %144 : vector<1x32x128xbf16> to vector<32x128xbf16>
    %146 = arith.truncf %143 : vector<128x128xf32> to vector<128x128xbf16>
    %cst_58 = arith.constant dense<0.000000e+00> : vector<32x128xf32>
    %147 = tpu.matmul %145, %146, %cst_58 {dimension_numbers = #tpu.dot_dimension_numbers<[1], [0], [0], [1], [0, 0, 1, 1], [], []>} : vector<32x128xbf16>, vector<128x128xbf16>, vector<32x128xf32> -> vector<32x128xf32>
    %148 = vector.extract_strided_slice %123 {offsets = [128, 0], sizes = [32, 1], strides = [1, 1]} : vector<160x1xf32> to vector<32x1xf32>
    %149 = vector.broadcast %148 : vector<32x1xf32> to vector<32x128xf32>
    %150 = arith.addf %147, %149 : vector<32x128xf32>
    %151 = arith.addf %99, %150 : vector<32x128xf32>
    %c0_59 = arith.constant 0 : index
    %c0_60 = arith.constant 0 : index
    %152 = vector.load %arg2[%c0_59, %c0_60] : memref<128x128xf32, #tpu.memory_space<vmem>>, vector<128x128xf32>
    %cst_61 = arith.constant dense<0.000000e+00> : vector<128xf32>
    %153 = vector.multi_reduction <add>, %151, %cst_61 [0] : vector<32x128xf32> to vector<128xf32>
    %154 = vector.shape_cast %153 : vector<128xf32> to vector<1x128xf32>
    %cst_62 = arith.constant dense<0.000000e+00> : vector<1x128xf32>
    %155 = tpu.matmul %154, %152, %cst_62 {dimension_numbers = #tpu.dot_dimension_numbers<[1], [0], [0], [1], [0, 0, 1, 1], [], []>} : vector<1x128xf32>, vector<128x128xf32>, vector<1x128xf32> -> vector<1x128xf32>
    %156 = vector.broadcast %155 : vector<1x128xf32> to vector<32x128xf32>
    %157 = arith.subf %151, %156 : vector<32x128xf32>
    %158 = arith.mulf %157, %157 : vector<32x128xf32>
    %cst_63 = arith.constant dense<0.000000e+00> : vector<128xf32>
    %159 = vector.multi_reduction <add>, %158, %cst_63 [0] : vector<32x128xf32> to vector<128xf32>
    %160 = vector.shape_cast %159 : vector<128xf32> to vector<1x128xf32>
    %cst_64 = arith.constant dense<0.000000e+00> : vector<1x128xf32>
    %161 = tpu.matmul %160, %152, %cst_64 {dimension_numbers = #tpu.dot_dimension_numbers<[1], [0], [0], [1], [0, 0, 1, 1], [], []>} : vector<1x128xf32>, vector<128x128xf32>, vector<1x128xf32> -> vector<1x128xf32>
    %162 = vector.extract_strided_slice %0 {offsets = [8, 0], sizes = [1, 128], strides = [1, 1]} : vector<10x128xf32> to vector<1x128xf32>
    %cst_65 = arith.constant 9.99999974E-6 : f32
    %163 = vector.broadcast %cst_65 : f32 to vector<1x128xf32>
    %164 = arith.addf %161, %163 : vector<1x128xf32>
    %165 = math.rsqrt %164 : vector<1x128xf32>
    %166 = arith.mulf %162, %165 : vector<1x128xf32>
    %167 = vector.extract_strided_slice %0 {offsets = [9, 0], sizes = [1, 128], strides = [1, 1]} : vector<10x128xf32> to vector<1x128xf32>
    %168 = arith.mulf %155, %166 : vector<1x128xf32>
    %169 = arith.subf %167, %168 : vector<1x128xf32>
    %170 = vector.broadcast %166 : vector<1x128xf32> to vector<32x128xf32>
    %171 = arith.mulf %151, %170 : vector<32x128xf32>
    %172 = vector.broadcast %169 : vector<1x128xf32> to vector<32x128xf32>
    %173 = arith.addf %171, %172 : vector<32x128xf32>
    %c0_66 = arith.constant 0 : index
    %c0_67 = arith.constant 0 : index
    %174 = vector.load %arg6[%c0_66, %c0_67] : memref<32x128xf32, #tpu.memory_space<vmem>>, vector<32x128xf32>
    tpu.vector_store %arg6[%c0_66, %c0_67], %173 {strides = array<i32>} : memref<32x128xf32, #tpu.memory_space<vmem>>, vector<32x128xf32>,
    return
  }
}

</mosaic_0001>

<bundles_post_ra>
// kernel: encoder_forward.1
= control target key start
LH: loop header
LB: loop body
LE: loop exit
PB: predicated region body
PF: predicated region fallthrough
CT: control target
= control target key end

     0   :  { %vm400_vm6 = vcmask 261120   ;;  %s2597_s2 = inlined_call_operand.vmem [shape: f32[128,128], index: 2, kind: input, shape index: {}]   ;;  %s2598_s0 = inlined_call_operand.vmem [shape: f32[32,128], index: 0, kind: input, shape index: {}, may-alias: {0,6}]   ;;  %s2599_s1 = inlined_call_operand.vmem [shape: f32[10,128], index: 1, kind: input, shape index: {}]   ;;  %s2600_s5 = inlined_call_operand.vmem [shape: f32[2,160,1], index: 5, kind: input, shape index: {}]   ;;  %s2601_s3 = inlined_call_operand.vmem [shape: bf16[2,128,32], index: 3, kind: input, shape index: {}]   ;;  %s2602_s4 = inlined_call_operand.vmem [shape: bf16[2,32,128], index: 4, kind: input, shape index: {}]   ;;  %s2603_s6 = inlined_call_operand.vmem [shape: f32[32,128], index: 6, kind: output, shape index: {}, may-alias: {0,6}]  }
   0x1   :  { %v1723_v0 = vld [vmem:[%s2597_s2 + $0x78] sm:$0xff]  ;;  %v1728_v1 = vld [vmem:[%s2597_s2 + $0x70] sm:$0xff]  ;;  %v1735_v2 = vld [vmem:[%s2597_s2 + $0x68] sm:$0xff] }
   0x2   :  { %55 = vmatpush.msra.mxu0 %v1723_v0  ;;  %93 = vmatpush.msra.mxu1 %v1723_v0  ;;  %v1744_v3 = vld [vmem:[%s2597_s2 + $0x60] sm:$0xff]  ;;  %v1757_v5 = vld [vmem:[%s2598_s0 + $0x8] sm:$0xff]  ;;  %v1763_v6 = vld [vmem:[%s2597_s2 + $0x58] sm:$0xff] }
   0x3   :  { %152 = vmatpush.msra.mxu2 %v1723_v0  ;;  %732 = vmatpush.msra.mxu3 %v1723_v0  ;;  %v1752_v4 = vld [vmem:[%s2598_s0] sm:$0xff]  ;;  %v1768_v7 = vld [vmem:[%s2598_s0 + $0x10] sm:$0xff]  ;;  %v1778_v9 = vld [vmem:[%s2598_s0 + $0x18] sm:$0xff] }
   0x4   :  { %56 = vmatpush.msra.mxu0 %v1728_v1  ;;  %94 = vmatpush.msra.mxu1 %v1728_v1  ;;  %v46_v8 = vadd.f32 %v1757_v5, %v1752_v4  ;;  %v1784_v10 = vld [vmem:[%s2597_s2 + $0x50] sm:$0xff]  ;;  %v1794_v12 = vld [vmem:[%s2597_s2 + $0x48] sm:$0xff]  ;;  %v1804_v14 = vld [vmem:[%s2597_s2 + $0x40] sm:$0xff] }
   0x5   :  { %153 = vmatpush.msra.mxu2 %v1728_v1  ;;  %733 = vmatpush.msra.mxu3 %v1728_v1  ;;  %v1813_v16 = vld [vmem:[%s2597_s2 + $0x38] sm:$0xff]  ;;  %v1822_v18 = vld [vmem:[%s2597_s2 + $0x30] sm:$0xff]  ;;  %v1831_v20 = vld [vmem:[%s2597_s2 + $0x28] sm:$0xff] }
   0x6   :  { %57 = vmatpush.msra.mxu0 %v1735_v2  ;;  %95 = vmatpush.msra.mxu1 %v1735_v2  ;;  %v47_v11 = vadd.f32 %v46_v8, %v1768_v7  ;;  %v1840_v21 = vld [vmem:[%s2597_s2 + $0x20] sm:$0xff]  ;;  %v1849_v23 = vld [vmem:[%s2597_s2 + $0x18] sm:$0xff]  ;;  %v1858_v24 = vld [vmem:[%s2597_s2 + $0x10] sm:$0xff] }
   0x7   :  { %154 = vmatpush.msra.mxu2 %v1735_v2  ;;  %734 = vmatpush.msra.mxu3 %v1735_v2  ;;  %v1867_v26 = vld [vmem:[%s2597_s2 + $0x8] sm:$0xff]  ;;  %v1876_v27 = vld [vmem:[%s2597_s2] sm:$0xff] }
   0x8   :  { %58 = vmatpush.msra.mxu0 %v1744_v3  ;;  %96 = vmatpush.msra.mxu1 %v1744_v3  ;;  %v48_v13 = vadd.f32 %v47_v11, %v1778_v9  ;;  %v1911_v55 = vld [vmem:[%s2599_s1] sm:$0xff] }
   0x9   :  { %155 = vmatpush.msra.mxu2 %v1744_v3  ;;  %735 = vmatpush.msra.mxu3 %v1744_v3 }
   0xa   :  { %59 = vmatpush.msra.mxu0 %v1763_v6  ;;  %97 = vmatpush.msra.mxu1 %v1763_v6  ;;  %v49_v15 = vrot.slane %v48_v13, 4 }
   0xb   :  { %156 = vmatpush.msra.mxu2 %v1763_v6  ;;  %736 = vmatpush.msra.mxu3 %v1763_v6 }
   0xc   :  { %60 = vmatpush.msra.mxu0 %v1784_v10  ;;  %98 = vmatpush.msra.mxu1 %v1784_v10  ;;  %v50_v17 = vadd.f32 %v49_v15, %v48_v13 }
   0xd   :  { %157 = vmatpush.msra.mxu2 %v1784_v10  ;;  %737 = vmatpush.msra.mxu3 %v1784_v10 }
   0xe   :  { %61 = vmatpush.msra.mxu0 %v1794_v12  ;;  %99 = vmatpush.msra.mxu1 %v1794_v12  ;;  %v51_v19 = vrot.slane %v50_v17, 2 }
   0xf   :  { %158 = vmatpush.msra.mxu2 %v1794_v12  ;;  %738 = vmatpush.msra.mxu3 %v1794_v12 }
  0x10   :  { %62 = vmatpush.msra.mxu0 %v1804_v14  ;;  %100 = vmatpush.msra.mxu1 %v1804_v14  ;;  %v52_v22 = vadd.f32 %v51_v19, %v50_v17 }
  0x11   :  { %159 = vmatpush.msra.mxu2 %v1804_v14  ;;  %739 = vmatpush.msra.mxu3 %v1804_v14 }
  0x12   :  { %63 = vmatpush.msra.mxu0 %v1813_v16  ;;  %101 = vmatpush.msra.mxu1 %v1813_v16  ;;  %v53_v25 = vrot.slane %v52_v22, 1 }
  0x13   :  { %160 = vmatpush.msra.mxu2 %v1813_v16  ;;  %740 = vmatpush.msra.mxu3 %v1813_v16 }
  0x14   :  { %64 = vmatpush.msra.mxu0 %v1822_v18  ;;  %102 = vmatpush.msra.mxu1 %v1822_v18  ;;  %v54_v28 = vadd.f32 %v53_v25, %v52_v22 }
  0x15   :  { %161 = vmatpush.msra.mxu2 %v1822_v18  ;;  %741 = vmatpush.msra.mxu3 %v1822_v18 }
  0x16   :  { %65 = vmatpush.msra.mxu0 %v1831_v20  ;;  %103 = vmatpush.msra.mxu1 %v1831_v20 }
  0x17   :  { %162 = vmatpush.msra.mxu2 %v1831_v20  ;;  %742 = vmatpush.msra.mxu3 %v1831_v20 }
  0x18   :  { %66 = vmatpush.msra.mxu0 %v1840_v21  ;;  %104 = vmatpush.msra.mxu1 %v1840_v21 }
  0x19   :  { %163 = vmatpush.msra.mxu2 %v1840_v21  ;;  %743 = vmatpush.msra.mxu3 %v1840_v21 }
  0x1a   :  { %67 = vmatpush.msra.mxu0 %v1849_v23  ;;  %105 = vmatpush.msra.mxu1 %v1849_v23 }
  0x1b   :  { %164 = vmatpush.msra.mxu2 %v1849_v23  ;;  %744 = vmatpush.msra.mxu3 %v1849_v23 }
  0x1c   :  { %68 = vmatpush.msra.mxu0 %v1858_v24  ;;  %106 = vmatpush.msra.mxu1 %v1858_v24 }
  0x1d   :  { %165 = vmatpush.msra.mxu2 %v1858_v24  ;;  %745 = vmatpush.msra.mxu3 %v1858_v24 }
  0x1e   :  { %69 = vmatpush.msra.mxu0 %v1867_v26  ;;  %107 = vmatpush.msra.mxu1 %v1867_v26 }
  0x1f   :  { %166 = vmatpush.msra.mxu2 %v1867_v26  ;;  %746 = vmatpush.msra.mxu3 %v1867_v26 }
  0x20   :  { %70 = vmatpush.msra.mxu0 %v1876_v27  ;;  %108 = vmatpush.msra.mxu1 %v1876_v27 }
  0x21   :  { %71 = vmatmul.f32.vlgmr.msra.gmra.mxu0 %v54_v28  ;;  %167 = vmatpush.msra.mxu2 %v1876_v27 }
  0x22   :  { %747 = vmatpush.msra.mxu3 %v1876_v27 }
  0x23   :  { %190 = vmatpush.msrb.mxu2 %v1723_v0 }
  0x25   :  { %191 = vmatpush.msrb.mxu2 %v1728_v1 }
  0x27   :  { %192 = vmatpush.msrb.mxu2 %v1735_v2 }
  0x29   :  { %193 = vmatpush.msrb.mxu2 %v1744_v3 }
  0x2b   :  { %194 = vmatpush.msrb.mxu2 %v1763_v6 }
  0x2d   :  { %195 = vmatpush.msrb.mxu2 %v1784_v10 }
  0x2f   :  { %196 = vmatpush.msrb.mxu2 %v1794_v12 }
  0x31   :  { %197 = vmatpush.msrb.mxu2 %v1804_v14 }
  0x33   :  { %198 = vmatpush.msrb.mxu2 %v1813_v16 }
  0x35   :  { %199 = vmatpush.msrb.mxu2 %v1822_v18 }
  0x37   :  { %200 = vmatpush.msrb.mxu2 %v1831_v20 }
  0x39   :  { %201 = vmatpush.msrb.mxu2 %v1840_v21 }
  0x3b   :  { %202 = vmatpush.msrb.mxu2 %v1849_v23 }
  0x3d   :  { %203 = vmatpush.msrb.mxu2 %v1858_v24 }
  0x3f   :  { %204 = vmatpush.msrb.mxu2 %v1867_v26 }
  0x41   :  { %205 = vmatpush.msrb.mxu2 %v1876_v27 }
  0x9e   :  { %v72_v29 = vpop.f32.mrf.mxu0 }
  0x9f   :  { %v75_v30 = vperm.slane %v72_v29, 0 }
  0xa1   :  { %v76_v31 = vsub.f32 %v1752_v4, %v75_v30  ;;  %v77_v32 = vsub.f32 %v1757_v5, %v75_v30  ;;  %v78_v33 = vsub.f32 %v1768_v7, %v75_v30  ;;  %v79_v34 = vsub.f32 %v1778_v9, %v75_v30 }
  0xa3   :  { %v80_v35 = vmul.f32 %v76_v31, %v76_v31  ;;  %v81_v36 = vmul.f32 %v77_v32, %v77_v32  ;;  %v82_v37 = vmul.f32 %v78_v33, %v78_v33  ;;  %v83_v39 = vmul.f32 %v79_v34, %v79_v34 }
  0xa5   :  { %v84_v38 = vadd.f32 %v81_v36, %v80_v35 }
  0xa7   :  { %v85_v40 = vadd.f32 %v84_v38, %v82_v37 }
  0xa9   :  { %v86_v41 = vadd.f32 %v85_v40, %v83_v39 }
  0xab   :  { %v87_v42 = vrot.slane %v86_v41, 4 }
  0xad   :  { %v88_v43 = vadd.f32 %v87_v42, %v86_v41 }
  0xaf   :  { %v89_v44 = vrot.slane %v88_v43, 2 }
  0xb1   :  { %v90_v45 = vadd.f32 %v89_v44, %v88_v43 }
  0xb3   :  { %v91_v46 = vrot.slane %v90_v45, 1 }
  0xb5   :  { %v92_v47 = vadd.f32 %v91_v46, %v90_v45 }
  0xb7   :  { %109 = vmatmul.f32.vlgmr.msra.gmra.mxu1 %v92_v47 }
 0x134   :  { %v110_v48 = vpop.f32.mrf.mxu1 }
 0x135   :  { %v111_v49 = vadd.f32 1e-05, %v110_v48 }
 0x137   :  { %1593 = vrsqrt.f32 %v111_v49  ;;  %vm119_vm1 = vweird.f32 %v111_v49 }
 0x13d   :  { %v1594_v50 = vpop.eup %1593 }
 0x13e   :  { %v114_v51 = vmul.f32 %v1594_v50, %v111_v49  ;;  %vm120_vm0 = vweird.f32 %v1594_v50 }
 0x13f   :  { %vm121_vm2 = vmor %vm119_vm1, %vm120_vm0 }
 0x140   :  { %v115_v52 = vmul.f32 %v1594_v50, %v114_v51 }
 0x142   :  { %v116_v53 = vmul.f32 0.5, %v115_v52 }
 0x144   :  { %v117_v54 = vsub.f32 1.5, %v116_v53 }
 0x146   :  { %v118_v56 = vmul.f32 %v1594_v50, %v117_v54 }
 0x148   :  { %v122_v57 = vsel %vm121_vm2, %v1594_v50, %v118_v56 }
 0x149   :  { %v123_v58 = vmul.f32 %v122_v57, %v1911_v55  ;;  %v255_v57 = vld [vmem:[%s2600_s5 + $0x68] sm:$0xff] }
 0x14b   :  { %v124_v59 = vmul.f32 %v123_v58, %v72_v29  ;;  %v129_v61 = vperm.slane %v123_v58, 0  ;;  %v253_v58 = vld [vmem:[%s2600_s5 + $0x58] sm:$0xff] }
 0x14d   :  { %v126_v60 = vrot.slane %v124_v59, 7  ;;  %v130_v63 = vmul.f32 %v129_v61, %v1752_v4  ;;  %v131_v8 = vmul.f32 %v129_v61, %v1757_v5  ;;  %v132_v11 = vmul.f32 %v129_v61, %v1768_v7 }
 0x14e   :  { %v133_v15 = vmul.f32 %v129_v61, %v1778_v9  ;;  %v244_v61 = vld [vmem:[%s2600_s5 + $0x10] sm:$0xff] }
 0x14f   :  { %v128_v62 = vsub.f32 %v1911_v55, %v126_v60 }
 0x151   :  { %v134_v13 = vperm.slane %v128_v62, 1 }
 0x153   :  { %v135_v17 = vadd.f32 %v134_v13, %v130_v63  ;;  %v136_v19 = vadd.f32 %v134_v13, %v131_v8  ;;  %v137_v22 = vadd.f32 %v134_v13, %v132_v11  ;;  %v138_v25 = vadd.f32 %v134_v13, %v133_v15  ;;  %v251_v13 = vld [vmem:[%s2600_s5 + $0x48] sm:$0xff]  ;;  %v248_v15 = vld [vmem:[%s2600_s5 + $0x30] sm:$0xff] }
 0x155   :  { %v1920_v28 = vadd.f32 %v135_v17, %v1752_v4  ;;  %v1923_v29 = vadd.f32 %v136_v19, %v1757_v5  ;;  %v1926_v30 = vadd.f32 %v137_v22, %v1768_v7  ;;  %v1931_v32 = vadd.f32 %v138_v25, %v1778_v9  ;;  %v243_v19 = vld [vmem:[%s2600_s5 + $0x8] sm:$0xff] }
 0x157   :  { %v143_v31 = vadd.f32 %v1923_v29, %v1920_v28 }
 0x159   :  { %v144_v33 = vadd.f32 %v143_v31, %v1926_v30 }
 0x15b   :  { %v145_v34 = vadd.f32 %v144_v33, %v1931_v32 }
 0x15d   :  { %v146_v35 = vrot.slane %v145_v34, 4 }
 0x15f   :  { %v147_v36 = vadd.f32 %v146_v35, %v145_v34 }
 0x161   :  { %v148_v4 = vrot.slane %v147_v36, 2 }
 0x163   :  { %v149_v37 = vadd.f32 %v148_v4, %v147_v36 }
 0x165   :  { %v150_v38 = vrot.slane %v149_v37, 1 }
 0x167   :  { %v151_v5 = vadd.f32 %v150_v38, %v149_v37 }
 0x169   :  { %168 = vmatmul.f32.vlgmr.msra.gmra.mxu2 %v151_v5  ;;  %v246_v5 = vld [vmem:[%s2600_s5 + $0x20] sm:$0xff] }
 0x16a   :  { %694 = vmatpush.msra.mxu2 %v1723_v0 }
 0x16c   :  { %695 = vmatpush.msra.mxu2 %v1728_v1 }
 0x16e   :  { %696 = vmatpush.msra.mxu2 %v1735_v2 }
 0x170   :  { %697 = vmatpush.msra.mxu2 %v1744_v3 }
 0x172   :  { %698 = vmatpush.msra.mxu2 %v1763_v6 }
 0x174   :  { %699 = vmatpush.msra.mxu2 %v1784_v10 }
 0x176   :  { %700 = vmatpush.msra.mxu2 %v1794_v12 }
 0x178   :  { %701 = vmatpush.msra.mxu2 %v1804_v14 }
 0x17a   :  { %702 = vmatpush.msra.mxu2 %v1813_v16 }
 0x17c   :  { %703 = vmatpush.msra.mxu2 %v1822_v18 }
 0x17e   :  { %704 = vmatpush.msra.mxu2 %v1831_v20 }
 0x180   :  { %705 = vmatpush.msra.mxu2 %v1840_v21 }
 0x182   :  { %706 = vmatpush.msra.mxu2 %v1849_v23 }
 0x184   :  { %707 = vmatpush.msra.mxu2 %v1858_v24 }
 0x186   :  { %708 = vmatpush.msra.mxu2 %v1867_v26 }
 0x188   :  { %709 = vmatpush.msra.mxu2 %v1876_v27 }
 0x1ec   :  { %v1951_v7 = vpop.f32.mrf.mxu2 }
 0x1ed   :  { %v172_v9 = vperm.slane %v1951_v7, 0 }
 0x1ef   :  { %v173_v39 = vsub.f32 %v1920_v28, %v172_v9  ;;  %v174_v40 = vsub.f32 %v1923_v29, %v172_v9  ;;  %v175_v41 = vsub.f32 %v1926_v30, %v172_v9  ;;  %v176_v42 = vsub.f32 %v1931_v32, %v172_v9  ;;  %v1569_v9 = vld [vmem:[%s2601_s3] sm:$0xff] }
 0x1f1   :  { %v177_v43 = vmul.f32 %v173_v39, %v173_v39  ;;  %v178_v44 = vmul.f32 %v174_v40, %v174_v40  ;;  %v179_v45 = vmul.f32 %v175_v41, %v175_v41  ;;  %v180_v47 = vmul.f32 %v176_v42, %v176_v42  ;;  %v245_v39 = vld [vmem:[%s2600_s5 + $0x18] sm:$0xff]  ;;  %v242_v40 = vld [vmem:[%s2600_s5] sm:$0xff]  ;;  %v1570_v41 = vld [vmem:[%s2601_s3 + $0x8] sm:$0xff] }
 0x1f2   :  { %v260_v42 = vld [vmem:[%s2600_s5 + $0x90] sm:$0xff] }
 0x1f3   :  { %v181_v46 = vadd.f32 %v178_v44, %v177_v43  ;;  %v1571_v43 = vld [vmem:[%s2601_s3 + $0x10] sm:$0xff]  ;;  %v258_v44 = vld [vmem:[%s2600_s5 + $0x80] sm:$0xff] }
 0x1f5   :  { %v182_v48 = vadd.f32 %v181_v46, %v179_v45  ;;  %v1496_v45 = vld [vmem:[%s2600_s5 + $0x118] sm:$0xff] }
 0x1f6   :  { %v261_v46 = vld [vmem:[%s2600_s5 + $0x98] sm:$0xff] }
 0x1f7   :  { %v183_v49 = vadd.f32 %v182_v48, %v180_v47  ;;  %v1491_v47 = vld [vmem:[%s2600_s5 + $0xf0] sm:$0xff]  ;;  %v1572_v48 = vld [vmem:[%s2601_s3 + $0x18] sm:$0xff] }
 0x1f9   :  { %v184_v50 = vrot.slane %v183_v49, 4 }
 0x1fb   :  { %v185_v51 = vadd.f32 %v184_v50, %v183_v49  ;;  %v1493_v49 = vld [vmem:[%s2600_s5 + $0x100] sm:$0xff]  ;;  %v1490_v50 = vld [vmem:[%s2600_s5 + $0xe8] sm:$0xff] }
 0x1fd   :  { %v186_v52 = vrot.slane %v185_v51, 2 }
 0x1ff   :  { %v187_v53 = vadd.f32 %v186_v52, %v185_v51  ;;  %v259_v51 = vld [vmem:[%s2600_s5 + $0x88] sm:$0xff]  ;;  %v1492_v52 = vld [vmem:[%s2600_s5 + $0xf8] sm:$0xff] }
 0x201   :  { %v188_v54 = vrot.slane %v187_v53, 1 }
 0x203   :  { %v189_v56 = vadd.f32 %v188_v54, %v187_v53  ;;  %v1485_v53 = vld [vmem:[%s2600_s5 + $0xc0] sm:$0xff] }
 0x204   :  { %v1573_v54 = vld [vmem:[%s2601_s3 + $0x20] sm:$0xff] }
 0x205   :  { %206 = vmatmul.f32.vlgmr.msrb.gmra.mxu2 %v189_v56  ;;  %v1487_v56 = vld [vmem:[%s2600_s5 + $0xd0] sm:$0xff] }
 0x206   :  { %835 = vmatpush.msrb.mxu2 %v1723_v0  ;;  %v1684_v0 = vmov 0  }
 0x207   :  { %1590 = vset.pattern.permute.xlu0 %v1684_v0  ;;  %1592 = vset.pattern.permute.xlu2 %v1684_v0 }
 0x208   :  { %836 = vmatpush.msrb.mxu2 %v1728_v1  ;;  %v256_v1 = vld [vmem:[%s2600_s5 + $0x70] sm:$0xff]  ;;  %1591 = vset.pattern.permute.xlu1 %v1684_v0  ;;  %v1484_v0 = vld [vmem:[%s2600_s5 + $0xb8] sm:$0xff] }
 0x209   :  { %352 = vperm.xlu0 %1590, %v256_v1   ;;  %v1495_v1 = vld [vmem:[%s2600_s5 + $0x110] sm:$0xff] }
 0x20a   :  { %837 = vmatpush.msrb.mxu2 %v1735_v2  ;;  %v257_v2 = vld [vmem:[%s2600_s5 + $0x78] sm:$0xff] }
 0x20c   :  { %838 = vmatpush.msrb.mxu2 %v1744_v3 }
 0x20e   :  { %839 = vmatpush.msrb.mxu2 %v1763_v6 }
 0x210   :  { %840 = vmatpush.msrb.mxu2 %v1784_v10  ;;  %v250_v10 = vld [vmem:[%s2600_s5 + $0x40] sm:$0xff] }
 0x211   :  { %357 = vperm.xlu0 %1590, %v257_v2   ;;  %v1486_v2 = vld [vmem:[%s2600_s5 + $0xc8] sm:$0xff] }
 0x212   :  { %841 = vmatpush.msrb.mxu2 %v1794_v12 }
 0x214   :  { %842 = vmatpush.msrb.mxu2 %v1804_v14 }
 0x216   :  { %843 = vmatpush.msrb.mxu2 %v1813_v16 }
 0x218   :  { %844 = vmatpush.msrb.mxu2 %v1822_v18 }
 0x219   :  { %322 = vperm.xlu0 %1590, %v250_v10   ;;  %v1574_v10 = vld [vmem:[%s2601_s3 + $0x28] sm:$0xff] }
 0x21a   :  { %845 = vmatpush.msrb.mxu2 %v1831_v20  ;;  %v254_v20 = vld [vmem:[%s2600_s5 + $0x60] sm:$0xff] }
 0x21b   :  { %342 = vperm.xlu1 %1591, %v254_v20  }
 0x21c   :  { %846 = vmatpush.msrb.mxu2 %v1840_v21  ;;  %v252_v21 = vld [vmem:[%s2600_s5 + $0x50] sm:$0xff] }
 0x21d   :  { %332 = vperm.xlu2 %1592, %v252_v21   ;;  %v1498_v21 = vld [vmem:[%s2600_s5 + $0x128] sm:$0xff] }
 0x21e   :  { %847 = vmatpush.msrb.mxu2 %v1849_v23  ;;  %v249_v23 = vld [vmem:[%s2600_s5 + $0x38] sm:$0xff] }
 0x220   :  { %848 = vmatpush.msrb.mxu2 %v1858_v24 }
 0x221   :  { %317 = vperm.xlu0 %1590, %v249_v23  }
 0x222   :  { %849 = vmatpush.msrb.mxu2 %v1867_v26 }
 0x223   :  { %347 = vperm.xlu1 %1591, %v255_v57  }
 0x224   :  { %850 = vmatpush.msrb.mxu2 %v1876_v27 }
 0x225   :  { %337 = vperm.xlu2 %1592, %v253_v58  }
 0x229   :  { %292 = vperm.xlu0 %1590, %v244_v61   ;;  %v1576_v61 = vld [vmem:[%s2601_s3 + $0x38] sm:$0xff] }
 0x22b   :  { %327 = vperm.xlu1 %1591, %v251_v13   ;;  %v1499_v13 = vld [vmem:[%s2600_s5 + $0x130] sm:$0xff] }
 0x22d   :  { %312 = vperm.xlu2 %1592, %v248_v15  }
 0x231   :  { %287 = vperm.xlu0 %1590, %v243_v19  }
 0x233   :  { %302 = vperm.xlu1 %1591, %v246_v5  }
 0x239   :  { %642 = vperm.xlu0 %1590, %v260_v42  }
 0x23b   :  { %297 = vperm.xlu1 %1591, %v245_v39  }
 0x241   :  { %1004 = vperm.xlu0 %1590, %v1496_v45  }
 0x243   :  { %632 = vperm.xlu1 %1591, %v258_v44  }
 0x249   :  { %979 = vperm.xlu0 %1590, %v1491_v47  }
 0x24b   :  { %647 = vperm.xlu1 %1591, %v261_v46  }
 0x251   :  { %974 = vperm.xlu0 %1590, %v1490_v50  }
 0x253   :  { %989 = vperm.xlu1 %1591, %v1493_v49  }
 0x259   :  { %949 = vperm.xlu0 %1590, %v1485_v53  }
 0x25b   :  { %984 = vperm.xlu1 %1591, %v1492_v52  }
 0x261   :  { %944 = vperm.xlu0 %1590, %v1484_v0  }
 0x263   :  { %959 = vperm.xlu1 %1591, %v1487_v56  }
 0x26b   :  { %954 = vperm.xlu1 %1591, %v1486_v2  }
 0x277   :  { %v2112_v20 = vpop.permute.xlu2 %332 }
 0x288   :  { %v207_v3 = vpop.f32.mrf.mxu2 }
 0x289   :  { %v208_v6 = vadd.f32 1e-05, %v207_v3  ;;  %v1497_v3 = vld [vmem:[%s2600_s5 + $0x120] sm:$0xff] }
 0x28a   :  { %1279 = vperm.xlu0 %1590, %v1497_v3  }
 0x28b   :  { %1595 = vrsqrt.f32 %v208_v6  ;;  %vm216_vm4 = vweird.f32 %v208_v6 }
 0x291   :  { %v1596_v12 = vpop.eup %1595 }
 0x292   :  { %v211_v14 = vmul.f32 %v1596_v12, %v208_v6  ;;  %vm217_vm3 = vweird.f32 %v1596_v12  ;;  %v1494_v6 = vld [vmem:[%s2600_s5 + $0x108] sm:$0xff] }
 0x293   :  { %vm218_vm5 = vmor %vm216_vm4, %vm217_vm3 }
 0x294   :  { %v212_v16 = vmul.f32 %v1596_v12, %v211_v14  ;;  %v1500_v14 = vld [vmem:[%s2600_s5 + $0x138] sm:$0xff] }
 0x295   :  { %1294 = vperm.xlu0 %1590, %v1500_v14  }
 0x296   :  { %v213_v18 = vmul.f32 0.5, %v212_v16  ;;  %v1489_v16 = vld [vmem:[%s2600_s5 + $0xe0] sm:$0xff] }
 0x298   :  { %v214_v24 = vsub.f32 1.5, %v213_v18  ;;  %v2110_v18 = vpop.permute.xlu0 %352 }
 0x29a   :  { %v215_v26 = vmul.f32 %v1596_v12, %v214_v24  ;;  %v1575_v24 = vld [vmem:[%s2601_s3 + $0x30] sm:$0xff] }
 0x29c   :  { %v219_v27 = vsel %vm218_vm5, %v1596_v12, %v215_v26  ;;  %v1481_v12 = vld [vmem:[%s2600_s5 + $0xa0] sm:$0xff]  ;;  %v2122_v26 = vpop.permute.xlu2 %337 }
 0x29d   :  { %v221_v59 = vrot.slane %v219_v27, 6  ;;  %929 = vperm.xlu1 %1591, %v1481_v12   ;;  %v1488_v27 = vld [vmem:[%s2600_s5 + $0xd8] sm:$0xff] }
 0x29f   :  { %v223_v60 = vmul.f32 %v221_v59, %v1911_v55  ;;  %v1483_v59 = vld [vmem:[%s2600_s5 + $0xb0] sm:$0xff] }
 0x2a0   :  { %v2117_v23 = vpop.permute.xlu0 %357 }
 0x2a1   :  { %v225_v62 = vrot.slane %v223_v60, 2  ;;  %v232_v8 = vperm.slane %v223_v60, 2  ;;  %v2135_v60 = vpop.permute.xlu1 %342 }
 0x2a3   :  { %v227_v63 = vmul.f32 %v225_v62, %v1951_v7  ;;  %v235_v22 = vmul.f32 %v232_v8, %v1926_v30  ;;  %v236_v25 = vmul.f32 %v232_v8, %v1931_v32  ;;  %v233_v35 = vmul.f32 %v232_v8, %v1920_v28 }
 0x2a4   :  { %v234_v36 = vmul.f32 %v232_v8, %v1923_v29  ;;  %v2130_v58 = vpop.permute.xlu2 %312 }
 0x2a5   :  { %v229_v11 = vrot.slane %v227_v63, 5  ;;  %1284 = vperm.xlu1 %1591, %v1498_v21   ;;  %v1482_v63 = vld [vmem:[%s2600_s5 + $0xa8] sm:$0xff] }
 0x2a7   :  { %v231_v17 = vsub.f32 %v1911_v55, %v229_v11  ;;  %v247_v55 = vld [vmem:[%s2600_s5 + $0x28] sm:$0xff] }
 0x2a8   :  { %307 = vperm.xlu2 %1592, %v247_v55   ;;  %v2128_v57 = vpop.permute.xlu0 %322 }
 0x2a9   :  { %v237_v31 = vperm.slane %v231_v17, 3  ;;  %v2146_v11 = vpop.permute.xlu1 %347 }
 0x2ab   :  { %v240_v33 = vadd.f32 %v237_v31, %v235_v22  ;;  %v241_v34 = vadd.f32 %v237_v31, %v236_v25  ;;  %v238_v37 = vadd.f32 %v237_v31, %v233_v35  ;;  %v239_v38 = vadd.f32 %v237_v31, %v234_v36 }
 0x2ad   :  { %v279_v4 = vpack.c.bf16 %v241_v34, %v240_v33  ;;  %v278_v7 = vpack.c.bf16 %v239_v38, %v238_v37 }
 0x2af   :  { %431 = vmatpush.bf16.msrb.mxu0 %v279_v4 }
 0x2b0   :  { %282 = vperm.xlu2 %1592, %v242_v40   ;;  %v2140_v62 = vpop.permute.xlu0 %317 }
 0x2b1   :  { %v2151_v25 = vpop.permute.xlu1 %327 }
 0x2b3   :  { %432 = vmatpush.bf16.msrb.mxu0 %v278_v7 }
 0x2b6   :  { %1465 = vmatmul.msk.bf16.vlgmr.msrb.gmra.mxu0 %vm400_vm6, %v1569_v9 }
 0x2b8   :  { %637 = vperm.xlu2 %1592, %v259_v51   ;;  %v293_v15 = vpop.permute.xlu0 %292 }
 0x2b9   :  { %v303_v38 = vpop.permute.xlu1 %302 }
 0x2c0   :  { %999 = vperm.xlu2 %1592, %v1495_v1   ;;  %v288_v34 = vpop.permute.xlu0 %287 }
 0x2c1   :  { %v298_v45 = vpop.permute.xlu1 %297 }
 0x2c6   :  { %1466 = vmatmul.msk.bf16.gmra.mxu0 %vm400_vm6, %v1570_v41 }
 0x2c8   :  { %994 = vperm.xlu2 %1592, %v1494_v6  }
 0x2d0   :  { %969 = vperm.xlu2 %1592, %v1489_v16  }
 0x2d6   :  { %1467 = vmatmul.msk.bf16.gmra.mxu0 %vm400_vm6, %v1571_v43 }
 0x2d8   :  { %964 = vperm.xlu2 %1592, %v1488_v27  }
 0x2e0   :  { %939 = vperm.xlu2 %1592, %v1483_v59  }
 0x2e6   :  { %1468 = vmatmul.msk.bf16.gmra.mxu0 %vm400_vm6, %v1572_v48 }
 0x2e8   :  { %934 = vperm.xlu2 %1592, %v1482_v63  }
 0x2f0   :  { %1289 = vperm.xlu2 %1592, %v1499_v13  }
 0x2f6   :  { %1469 = vmatmul.msk.bf16.gmra.mxu0 %vm400_vm6, %v1573_v54 }
 0x302   :  { %v308_v8 = vpop.permute.xlu2 %307 }
 0x306   :  { %1470 = vmatmul.msk.bf16.gmra.mxu0 %vm400_vm6, %v1574_v10 }
 0x30a   :  { %v283_v17 = vpop.permute.xlu2 %282 }
 0x316   :  { %1471 = vmatmul.msk.bf16.gmra.mxu0 %vm400_vm6, %v1575_v24 }
 0x326   :  { %1472 = vmatmul.msk.bf16.gmra.mxu0 %vm400_vm6, %v1576_v61 }
 0x333   :  { %v434_v19 = vpop.f32.mrf.mxu0 }
 0x334   :  { %v435_v22 = vadd.f32 %v434_v19, %v283_v17 }
 0x336   :  { %v490_v31 = vmul.f32 0.044715, %v435_v22  ;;  %v474_v54 = vmul.f32 0.5, %v435_v22 }
 0x338   :  { %v506_v33 = vmul.f32 %v490_v31, %v435_v22 }
 0x33a   :  { %v522_v35 = vmul.f32 %v506_v33, %v435_v22 }
 0x33b   :  { %v436_v36 = vpop.f32.mrf.mxu0 }
 0x33c   :  { %v437_v55 = vadd.f32 %v436_v36, %v288_v34  ;;  %v538_v4 = vadd.f32 %v522_v35, %v435_v22 }
 0x33e   :  { %v491_v37 = vmul.f32 0.044715, %v437_v55  ;;  %v554_v7 = vmul.f32 0.7978846, %v538_v4  ;;  %v475_v56 = vmul.f32 0.5, %v437_v55 }
 0x340   :  { %v507_v5 = vmul.f32 %v491_v37, %v437_v55  ;;  %1597 = vtanh.f32 %v554_v7 }
 0x342   :  { %v523_v9 = vmul.f32 %v507_v5, %v437_v55 }
 0x343   :  { %v439_v39 = vpop.f32.mrf.mxu0 }
 0x344   :  { %v440_v40 = vadd.f32 %v439_v39, %v293_v15  ;;  %v539_v41 = vadd.f32 %v523_v9, %v437_v55 }
 0x346   :  { %v492_v42 = vmul.f32 0.044715, %v440_v40  ;;  %v555_v43 = vmul.f32 0.7978846, %v539_v41  ;;  %v1598_v46 = vpop.eup %1597  ;;  %v476_v33 = vmul.f32 0.5, %v440_v40 }
 0x347   :  { %v586_v51 = vadd.f32 1.0, %v1598_v46 }
 0x348   :  { %v508_v44 = vmul.f32 %v492_v42, %v440_v40  ;;  %1599 = vtanh.f32 %v555_v43 }
 0x349   :  { %v2153_v3 = vmul.f32 %v586_v51, %v474_v54 }
 0x34a   :  { %v524_v47 = vmul.f32 %v508_v44, %v440_v40 }
 0x34b   :  { %v441_v48 = vpop.f32.mrf.mxu0 }
 0x34c   :  { %v442_v49 = vadd.f32 %v441_v48, %v298_v45  ;;  %v540_v50 = vadd.f32 %v524_v47, %v440_v40 }
 0x34e   :  { %v1600_v52 = vpop.eup %1599  ;;  %v493_v53 = vmul.f32 0.044715, %v442_v49  ;;  %v556_v2 = vmul.f32 0.7978846, %v540_v50  ;;  %v477_v34 = vmul.f32 0.5, %v442_v49 }
 0x34f   :  { %v587_v0 = vadd.f32 1.0, %v1600_v52 }
 0x350   :  { %v509_v1 = vmul.f32 %v493_v53, %v442_v49  ;;  %1601 = vtanh.f32 %v556_v2 }
 0x351   :  { %v2155_v6 = vmul.f32 %v587_v0, %v475_v56 }
 0x352   :  { %v525_v10 = vmul.f32 %v509_v1, %v442_v49 }
 0x353   :  { %v444_v12 = vpop.f32.mrf.mxu0  ;;  %v622_v14 = vpack.c.bf16 %v2155_v6, %v2153_v3  ;;  %v2259_v3 = vld [vmem:[%s2597_s2 + $0x68] sm:$0xff]  ;;  %v2265_v6 = vld [vmem:[%s2597_s2 + $0x60] sm:$0xff] }
 0x354   :  { %v445_v16 = vadd.f32 %v444_v12, %v303_v38  ;;  %v541_v21 = vadd.f32 %v525_v10, %v442_v49 }
 0x356   :  { %v494_v24 = vmul.f32 0.044715, %v445_v16  ;;  %v557_v27 = vmul.f32 0.7978846, %v541_v21  ;;  %v1602_v61 = vpop.eup %1601  ;;  %v478_v50 = vmul.f32 0.5, %v445_v16 }
 0x357   :  { %v588_v19 = vadd.f32 1.0, %v1602_v61 }
 0x358   :  { %v510_v59 = vmul.f32 %v494_v24, %v445_v16  ;;  %1603 = vtanh.f32 %v557_v27 }
 0x359   :  { %v2159_v4 = vmul.f32 %v588_v19, %v476_v33 }
 0x35a   :  { %v526_v63 = vmul.f32 %v510_v59, %v445_v16 }
 0x35b   :  { %v446_v13 = vpop.f32.mrf.mxu0 }
 0x35c   :  { %v447_v15 = vadd.f32 %v446_v13, %v308_v8  ;;  %v542_v17 = vadd.f32 %v526_v63, %v445_v16 }
 0x35e   :  { %v1604_v22 = vpop.eup %1603  ;;  %v495_v31 = vmul.f32 0.044715, %v447_v15  ;;  %v558_v55 = vmul.f32 0.7978846, %v542_v17  ;;  %v479_v51 = vmul.f32 0.5, %v447_v15 }
 0x35f   :  { %v589_v35 = vadd.f32 1.0, %v1604_v22 }
 0x360   :  { %v511_v36 = vmul.f32 %v495_v31, %v447_v15  ;;  %1605 = vtanh.f32 %v558_v55 }
 0x361   :  { %v2161_v37 = vmul.f32 %v589_v35, %v477_v34 }
 0x362   :  { %v527_v38 = vmul.f32 %v511_v36, %v447_v15 }
 0x363   :  { %v449_v5 = vpop.f32.mrf.mxu0  ;;  %v623_v7 = vpack.c.bf16 %v2161_v37, %v2159_v4  ;;  %v2253_v4 = vld [vmem:[%s2597_s2 + $0x70] sm:$0xff] }
 0x364   :  { %v450_v8 = vadd.f32 %v449_v5, %v2130_v58  ;;  %v543_v9 = vadd.f32 %v527_v38, %v447_v15  ;;  %v2277_v37 = vld [vmem:[%s2597_s2 + $0x50] sm:$0xff] }
 0x366   :  { %v496_v39 = vmul.f32 0.044715, %v450_v8  ;;  %v559_v41 = vmul.f32 0.7978846, %v543_v9  ;;  %v1606_v42 = vpop.eup %1605  ;;  %v480_v27 = vmul.f32 0.5, %v450_v8 }
 0x367   :  { %v590_v47 = vadd.f32 1.0, %v1606_v42 }
 0x368   :  { %v512_v40 = vmul.f32 %v496_v39, %v450_v8  ;;  %1607 = vtanh.f32 %v559_v41 }
 0x369   :  { %v2167_v54 = vmul.f32 %v590_v47, %v478_v50 }
 0x36a   :  { %v528_v43 = vmul.f32 %v512_v40, %v450_v8 }
 0x36b   :  { %v451_v44 = vpop.f32.mrf.mxu0 }
 0x36c   :  { %v452_v45 = vadd.f32 %v451_v44, %v2140_v62  ;;  %v544_v46 = vadd.f32 %v528_v43, %v450_v8 }
 0x36e   :  { %v1608_v48 = vpop.eup %1607  ;;  %v497_v49 = vmul.f32 0.044715, %v452_v45  ;;  %v560_v58 = vmul.f32 0.7978846, %v544_v46  ;;  %v481_v59 = vmul.f32 0.5, %v452_v45 }
 0x36f   :  { %v591_v52 = vadd.f32 1.0, %v1608_v48 }
 0x370   :  { %v513_v53 = vmul.f32 %v497_v49, %v452_v45  ;;  %1609 = vtanh.f32 %v560_v58 }
 0x371   :  { %v2169_v56 = vmul.f32 %v591_v52, %v479_v51 }
 0x372   :  { %v529_v0 = vmul.f32 %v513_v53, %v452_v45 }
 0x373   :  { %v454_v1 = vpop.f32.mrf.mxu0  ;;  %v624_v2 = vpack.c.bf16 %v2169_v56, %v2167_v54  ;;  %v1578_v54 = vld [vmem:[%s2602_s4 + $0x8] sm:$0xff]  ;;  %v2292_v56 = vld [vmem:[%s2597_s2 + $0x40] sm:$0xff] }
 0x374   :  { %v545_v10 = vadd.f32 %v529_v0, %v452_v45  ;;  %v2201_v41 = vadd.f32 %v454_v1, %v2128_v57 }
 0x376   :  { %v561_v62 = vmul.f32 0.7978846, %v545_v10  ;;  %v1610_v12 = vpop.eup %1609  ;;  %v498_v46 = vmul.f32 0.044715, %v2201_v41 }
 0x377   :  { %v592_v16 = vadd.f32 1.0, %v1610_v12 }
 0x378   :  { %1611 = vtanh.f32 %v561_v62  ;;  %v514_v10 = vmul.f32 %v498_v46, %v2201_v41 }
 0x379   :  { %v2173_v63 = vmul.f32 %v592_v16, %v480_v27 }
 0x37b   :  { %v456_v21 = vpop.f32.mrf.mxu0 }
 0x37c   :  { %v2195_v9 = vadd.f32 %v456_v21, %v2151_v25 }
 0x37e   :  { %v1612_v24 = vpop.eup %1611 }
 0x37f   :  { %v593_v61 = vadd.f32 1.0, %v1612_v24 }
 0x381   :  { %v2175_v13 = vmul.f32 %v593_v61, %v481_v59  ;;  %v530_v59 = vmul.f32 %v514_v10, %v2201_v41 }
 0x383   :  { %v459_v15 = vpop.f32.mrf.mxu0  ;;  %v625_v17 = vpack.c.bf16 %v2175_v13, %v2173_v63  ;;  %v2247_v63 = vld [vmem:[%s2597_s2 + $0x78] sm:$0xff]  ;;  %v2304_v13 = vld [vmem:[%s2597_s2 + $0x30] sm:$0xff] }
 0x384   :  { %v2191_v5 = vadd.f32 %v459_v15, %v2112_v20  ;;  %v499_v20 = vmul.f32 0.044715, %v2195_v9 }
 0x386   :  { %v500_v40 = vmul.f32 0.044715, %v2191_v5  ;;  %v515_v52 = vmul.f32 %v499_v20, %v2195_v9 }
 0x388   :  { %v516_v57 = vmul.f32 %v500_v40, %v2191_v5  ;;  %v531_v21 = vmul.f32 %v515_v52, %v2195_v9 }
 0x38a   :  { %v532_v1 = vmul.f32 %v516_v57, %v2191_v5 }
 0x38b   :  { %v461_v19 = vpop.f32.mrf.mxu0 }
 0x38c   :  { %v2186_v35 = vadd.f32 %v461_v19, %v2122_v26  ;;  %v548_v27 = vadd.f32 %v532_v1, %v2191_v5  ;;  %v547_v19 = vadd.f32 %v531_v21, %v2195_v9  ;;  %v484_v1 = vmul.f32 0.5, %v2191_v5  ;;  %v2316_v5 = vld [vmem:[%s2597_s2 + $0x20] sm:$0xff] }
 0x38d   :  { %v482_v21 = vmul.f32 0.5, %v2201_v41 }
 0x393   :  { %v464_v22 = vpop.f32.mrf.mxu0 }
 0x394   :  { %v2183_v34 = vadd.f32 %v464_v22, %v2135_v60  ;;  %v564_v22 = vmul.f32 0.7978846, %v548_v27 }
 0x396   :  { %v502_v55 = vmul.f32 0.044715, %v2183_v34 }
 0x398   :  { %v518_v26 = vmul.f32 %v502_v55, %v2183_v34  ;;  %v563_v55 = vmul.f32 0.7978846, %v547_v19 }
 0x39a   :  { %v534_v45 = vmul.f32 %v518_v26, %v2183_v34 }
 0x39b   :  { %v466_v31 = vpop.f32.mrf.mxu0 }
 0x39c   :  { %v2180_v33 = vadd.f32 %v466_v31, %v2146_v11  ;;  %v501_v11 = vmul.f32 0.044715, %v2186_v35  ;;  %v550_v53 = vadd.f32 %v534_v45, %v2183_v34  ;;  %v546_v31 = vadd.f32 %v530_v59, %v2201_v41  ;;  %v2328_v41 = vld [vmem:[%s2597_s2 + $0x10] sm:$0xff]  ;;  %v2334_v59 = vld [vmem:[%s2597_s2 + $0x8] sm:$0xff] }
 0x39e   :  { %v503_v36 = vmul.f32 0.044715, %v2180_v33  ;;  %v517_v25 = vmul.f32 %v501_v11, %v2186_v35  ;;  %v566_v16 = vmul.f32 0.7978846, %v550_v53  ;;  %v562_v11 = vmul.f32 0.7978846, %v546_v31  ;;  %v638_v31 = vpop.permute.xlu2 %637 }
 0x39f   :  { %v487_v45 = vmul.f32 0.5, %v2180_v33 }
 0x3a0   :  { %v519_v39 = vmul.f32 %v503_v36, %v2180_v33  ;;  %v533_v51 = vmul.f32 %v517_v25, %v2186_v35 }
 0x3a2   :  { %v549_v12 = vadd.f32 %v533_v51, %v2186_v35 }
 0x3a3   :  { %v469_v38 = vpop.f32.mrf.mxu0 }
 0x3a4   :  { %v470_v8 = vadd.f32 %v469_v38, %v2110_v18  ;;  %v535_v18 = vmul.f32 %v519_v39, %v2180_v33  ;;  %v565_v15 = vmul.f32 0.7978846, %v549_v12 }
 0x3a6   :  { %v504_v60 = vmul.f32 0.044715, %v470_v8  ;;  %v551_v50 = vadd.f32 %v535_v18, %v2180_v33  ;;  %v488_v40 = vmul.f32 0.5, %v470_v8 }
 0x3a8   :  { %v520_v42 = vmul.f32 %v504_v60, %v470_v8 }
 0x3aa   :  { %v536_v43 = vmul.f32 %v520_v42, %v470_v8 }
 0x3ab   :  { %v471_v44 = vpop.f32.mrf.mxu0 }
 0x3ac   :  { %v472_v47 = vadd.f32 %v471_v44, %v2117_v23  ;;  %v552_v48 = vadd.f32 %v536_v43, %v470_v8  ;;  %v567_v23 = vmul.f32 0.7978846, %v551_v50  ;;  %v485_v8 = vmul.f32 0.5, %v2186_v35  ;;  %v1577_v35 = vld [vmem:[%s2602_s4] sm:$0xff] }
 0x3ae   :  { %v505_v49 = vmul.f32 0.044715, %v472_v47  ;;  %v568_v0 = vmul.f32 0.7978846, %v552_v48  ;;  %v489_v42 = vmul.f32 0.5, %v472_v47 }
 0x3b0   :  { %v521_v58 = vmul.f32 %v505_v49, %v472_v47  ;;  %1613 = vtanh.f32 %v568_v0  ;;  %v486_v49 = vmul.f32 0.5, %v2183_v34 }
 0x3b1   :  { %1615 = vtanh.f32 %v567_v23  ;;  %v483_v23 = vmul.f32 0.5, %v2195_v9  ;;  %v2322_v9 = vld [vmem:[%s2597_s2 + $0x18] sm:$0xff] }
 0x3b2   :  { %v537_v62 = vmul.f32 %v521_v58, %v472_v47  ;;  %1617 = vtanh.f32 %v566_v16 }
 0x3b4   :  { %v553_v24 = vadd.f32 %v537_v62, %v472_v47 }
 0x3b6   :  { %v569_v61 = vmul.f32 0.7978846, %v553_v24  ;;  %v1614_v36 = vpop.eup %1613 }
 0x3b7   :  { %v1616_v38 = vpop.eup %1615  ;;  %v600_v39 = vadd.f32 1.0, %v1614_v36 }
 0x3b8   :  { %1619 = vtanh.f32 %v569_v61  ;;  %v1618_v60 = vpop.eup %1617  ;;  %v599_v43 = vadd.f32 1.0, %v1616_v38  ;;  %v2340_v61 = vld [vmem:[%s2597_s2] sm:$0xff]  ;;  %v643_v38 = vpop.permute.xlu0 %642 }
 0x3b9   :  { %1621 = vtanh.f32 %v565_v15  ;;  %v616_v25 = vmul.f32 %v600_v39, %v488_v40  ;;  %v598_v46 = vadd.f32 1.0, %v1618_v60 }
 0x3ba   :  { %1623 = vtanh.f32 %v564_v22  ;;  %v615_v50 = vmul.f32 %v599_v43, %v487_v45  ;;  %v633_v22 = vpop.permute.xlu1 %632 }
 0x3bb   :  { %1625 = vtanh.f32 %v563_v55  ;;  %v614_v53 = vmul.f32 %v598_v46, %v486_v49 }
 0x3bc   :  { %1627 = vtanh.f32 %v562_v11 }
 0x3bd   :  { %v628_v0 = vpack.c.bf16 %v615_v50, %v614_v53 }
 0x3be   :  { %v1620_v26 = vpop.eup %1619 }
 0x3bf   :  { %v601_v20 = vadd.f32 1.0, %v1620_v26  ;;  %v1622_v18 = vpop.eup %1621 }
 0x3c0   :  { %v1624_v48 = vpop.eup %1623  ;;  %v597_v51 = vadd.f32 1.0, %v1622_v18 }
 0x3c1   :  { %v617_v44 = vmul.f32 %v601_v20, %v489_v42  ;;  %v1626_v52 = vpop.eup %1625  ;;  %v596_v47 = vadd.f32 1.0, %v1624_v48 }
 0x3c2   :  { %v1628_v58 = vpop.eup %1627  ;;  %v613_v10 = vmul.f32 %v597_v51, %v485_v8  ;;  %v595_v62 = vadd.f32 1.0, %v1626_v52  ;;  %v648_v42 = vpop.permute.xlu1 %647 }
 0x3c3   :  { %v629_v57 = vpack.c.bf16 %v617_v44, %v616_v25  ;;  %v612_v33 = vmul.f32 %v596_v47, %v484_v1  ;;  %v594_v12 = vadd.f32 1.0, %v1628_v58 }
 0x3c4   :  { %v611_v16 = vmul.f32 %v595_v62, %v483_v23 }
 0x3c5   :  { %662 = vmatpush.bf16.msrb.mxu1 %v629_v57  ;;  %v627_v34 = vpack.c.bf16 %v613_v10, %v612_v33  ;;  %v610_v24 = vmul.f32 %v594_v12, %v482_v21 }
 0x3c7   :  { %v626_v27 = vpack.c.bf16 %v611_v16, %v610_v24 }
 0x3c9   :  { %663 = vmatpush.bf16.msrb.mxu1 %v628_v0 }
 0x3cd   :  { %664 = vmatpush.bf16.msrb.mxu1 %v627_v34 }
 0x3d1   :  { %665 = vmatpush.bf16.msrb.mxu1 %v626_v27 }
 0x3d5   :  { %666 = vmatpush.bf16.msrb.mxu1 %v625_v17  ;;  %v2310_v17 = vld [vmem:[%s2597_s2 + $0x28] sm:$0xff] }
 0x3d9   :  { %667 = vmatpush.bf16.msrb.mxu1 %v624_v2  ;;  %v2298_v2 = vld [vmem:[%s2597_s2 + $0x38] sm:$0xff] }
 0x3dd   :  { %668 = vmatpush.bf16.msrb.mxu1 %v623_v7  ;;  %v2283_v7 = vld [vmem:[%s2597_s2 + $0x48] sm:$0xff] }
 0x3e1   :  { %669 = vmatpush.bf16.msrb.mxu1 %v622_v14  ;;  %v2271_v14 = vld [vmem:[%s2597_s2 + $0x58] sm:$0xff] }
 0x3e4   :  { %670 = vmatmul.bf16.vlgmr.msrb.gmra.mxu1 %v1577_v35 }
 0x3e5   :  { %797 = vmatpush.msra.mxu1 %v2247_v63 }
 0x3e7   :  { %798 = vmatpush.msra.mxu1 %v2253_v4 }
 0x3e9   :  { %799 = vmatpush.msra.mxu1 %v2259_v3 }
 0x3eb   :  { %800 = vmatpush.msra.mxu1 %v2265_v6 }
 0x3ed   :  { %801 = vmatpush.msra.mxu1 %v2271_v14 }
 0x3ef   :  { %802 = vmatpush.msra.mxu1 %v2277_v37 }
 0x3f1   :  { %803 = vmatpush.msra.mxu1 %v2283_v7 }
 0x3f3   :  { %804 = vmatpush.msra.mxu1 %v2292_v56 }
 0x3f4   :  { %675 = vmatmul.bf16.gmra.mxu1 %v1578_v54 }
 0x3f5   :  { %805 = vmatpush.msra.mxu1 %v2298_v2 }
 0x3f7   :  { %806 = vmatpush.msra.mxu1 %v2304_v13 }
 0x3f9   :  { %807 = vmatpush.msra.mxu1 %v2310_v17 }
 0x3fb   :  { %808 = vmatpush.msra.mxu1 %v2316_v5 }
 0x3fd   :  { %809 = vmatpush.msra.mxu1 %v2322_v9 }
 0x3ff   :  { %810 = vmatpush.msra.mxu1 %v2328_v41 }
 0x401   :  { %811 = vmatpush.msra.mxu1 %v2334_v59 }
 0x403   :  { %812 = vmatpush.msra.mxu1 %v2340_v61 }
 0x461   :  { %v671_v15 = vpop.f32.mrf.mxu1 }
 0x462   :  { %v672_v11 = vadd.f32 %v671_v15, %v633_v22 }
 0x464   :  { %v2347_v26 = vadd.f32 %v672_v11, %v1920_v28 }
 0x469   :  { %v673_v19 = vpop.f32.mrf.mxu1 }
 0x46a   :  { %v674_v55 = vadd.f32 %v673_v19, %v638_v31 }
 0x46c   :  { %v2344_v39 = vadd.f32 %v674_v55, %v1923_v29 }
 0x46e   :  { %v685_v43 = vadd.f32 %v2344_v39, %v2347_v26 }
 0x471   :  { %v676_v36 = vpop.f32.mrf.mxu1 }
 0x472   :  { %v677_v60 = vadd.f32 %v676_v36, %v643_v38  ;;  %v2382_v38 = vld [vmem:[%s2599_s1] sm:$0xff] }
 0x474   :  { %v2350_v40 = vadd.f32 %v677_v60, %v1926_v30 }
 0x476   :  { %v686_v25 = vadd.f32 %v685_v43, %v2350_v40 }
 0x479   :  { %v678_v20 = vpop.f32.mrf.mxu1 }
 0x47a   :  { %v679_v18 = vadd.f32 %v678_v20, %v648_v42 }
 0x47c   :  { %v2356_v44 = vadd.f32 %v679_v18, %v1931_v32 }
 0x47e   :  { %v687_v29 = vadd.f32 %v686_v25, %v2356_v44 }
 0x480   :  { %v688_v45 = vrot.slane %v687_v29, 4 }
 0x482   :  { %v689_v46 = vadd.f32 %v688_v45, %v687_v29 }
 0x484   :  { %v690_v28 = vrot.slane %v689_v46, 2 }
 0x486   :  { %v691_v48 = vadd.f32 %v690_v28, %v689_v46 }
 0x488   :  { %v692_v57 = vrot.slane %v691_v48, 1 }
 0x48a   :  { %v693_v30 = vadd.f32 %v692_v57, %v691_v48 }
 0x48c   :  { %710 = vmatmul.f32.vlgmr.msra.gmra.mxu2 %v693_v30 }
 0x48d   :  { %1341 = vmatpush.msra.mxu2 %v2247_v63 }
 0x48f   :  { %1342 = vmatpush.msra.mxu2 %v2253_v4 }
 0x491   :  { %1343 = vmatpush.msra.mxu2 %v2259_v3 }
 0x493   :  { %1344 = vmatpush.msra.mxu2 %v2265_v6 }
 0x495   :  { %1345 = vmatpush.msra.mxu2 %v2271_v14 }
 0x497   :  { %1346 = vmatpush.msra.mxu2 %v2277_v37 }
 0x499   :  { %1347 = vmatpush.msra.mxu2 %v2283_v7 }
 0x49b   :  { %1348 = vmatpush.msra.mxu2 %v2292_v56 }
 0x49d   :  { %1349 = vmatpush.msra.mxu2 %v2298_v2 }
 0x49f   :  { %1350 = vmatpush.msra.mxu2 %v2304_v13 }
 0x4a1   :  { %1351 = vmatpush.msra.mxu2 %v2310_v17 }
 0x4a3   :  { %1352 = vmatpush.msra.mxu2 %v2316_v5 }
 0x4a5   :  { %1353 = vmatpush.msra.mxu2 %v2322_v9 }
 0x4a7   :  { %1354 = vmatpush.msra.mxu2 %v2328_v41 }
 0x4a9   :  { %1355 = vmatpush.msra.mxu2 %v2334_v59 }
 0x4ab   :  { %1356 = vmatpush.msra.mxu2 %v2340_v61 }
 0x50f   :  { %v711_v32 = vpop.f32.mrf.mxu2 }
 0x510   :  { %v714_v49 = vperm.slane %v711_v32, 0 }
 0x512   :  { %v715_v50 = vsub.f32 %v2347_v26, %v714_v49  ;;  %v716_v51 = vsub.f32 %v2344_v39, %v714_v49  ;;  %v717_v52 = vsub.f32 %v2350_v40, %v714_v49  ;;  %v718_v53 = vsub.f32 %v2356_v44, %v714_v49 }
 0x514   :  { %v719_v8 = vmul.f32 %v715_v50, %v715_v50  ;;  %v720_v47 = vmul.f32 %v716_v51, %v716_v51  ;;  %v721_v58 = vmul.f32 %v717_v52, %v717_v52  ;;  %v722_v1 = vmul.f32 %v718_v53, %v718_v53 }
 0x516   :  { %v723_v0 = vadd.f32 %v720_v47, %v719_v8 }
 0x518   :  { %v724_v10 = vadd.f32 %v723_v0, %v721_v58 }
 0x51a   :  { %v725_v62 = vadd.f32 %v724_v10, %v722_v1 }
 0x51c   :  { %v726_v33 = vrot.slane %v725_v62, 4 }
 0x51e   :  { %v727_v23 = vadd.f32 %v726_v33, %v725_v62 }
 0x520   :  { %v728_v12 = vrot.slane %v727_v23, 2 }
 0x522   :  { %v729_v34 = vadd.f32 %v728_v12, %v727_v23 }
 0x524   :  { %v730_v21 = vrot.slane %v729_v34, 1 }
 0x526   :  { %v731_v16 = vadd.f32 %v730_v21, %v729_v34 }
 0x528   :  { %748 = vmatmul.f32.vlgmr.msra.gmra.mxu3 %v731_v16 }
 0x5ab   :  { %v749_v24 = vpop.f32.mrf.mxu3 }
 0x5ac   :  { %v750_v27 = vadd.f32 1e-05, %v749_v24 }
 0x5ae   :  { %1629 = vrsqrt.f32 %v750_v27  ;;  %vm758_vm8 = vweird.f32 %v750_v27 }
 0x5b4   :  { %v1630_v35 = vpop.eup %1629 }
 0x5b5   :  { %v753_v54 = vmul.f32 %v1630_v35, %v750_v27  ;;  %vm759_vm7 = vweird.f32 %v1630_v35 }
 0x5b6   :  { %vm760_vm9 = vmor %vm758_vm8, %vm759_vm7 }
 0x5b7   :  { %v754_v15 = vmul.f32 %v1630_v35, %v753_v54 }
 0x5b9   :  { %v755_v19 = vmul.f32 0.5, %v754_v15 }
 0x5bb   :  { %v756_v22 = vsub.f32 1.5, %v755_v19 }
 0x5bd   :  { %v757_v31 = vmul.f32 %v1630_v35, %v756_v22 }
 0x5bf   :  { %v761_v36 = vsel %vm760_vm9, %v1630_v35, %v757_v31 }
 0x5c0   :  { %v763_v55 = vrot.slane %v761_v36, 4 }
 0x5c2   :  { %v765_v11 = vmul.f32 %v2382_v38, %v763_v55 }
 0x5c4   :  { %v767_v60 = vrot.slane %v765_v11, 4  ;;  %v774_v43 = vperm.slane %v765_v11, 4 }
 0x5c6   :  { %v769_v42 = vmul.f32 %v767_v60, %v711_v32  ;;  %v775_v25 = vmul.f32 %v774_v43, %v2347_v26  ;;  %v776_v29 = vmul.f32 %v774_v43, %v2344_v39  ;;  %v777_v45 = vmul.f32 %v774_v43, %v2350_v40 }
 0x5c7   :  { %v778_v28 = vmul.f32 %v774_v43, %v2356_v44 }
 0x5c8   :  { %v771_v20 = vrot.slane %v769_v42, 3 }
 0x5ca   :  { %v773_v18 = vsub.f32 %v2382_v38, %v771_v20 }
 0x5cc   :  { %v779_v46 = vperm.slane %v773_v18, 5 }
 0x5ce   :  { %v780_v48 = vadd.f32 %v779_v46, %v775_v25  ;;  %v781_v57 = vadd.f32 %v779_v46, %v776_v29  ;;  %v782_v30 = vadd.f32 %v779_v46, %v777_v45  ;;  %v783_v49 = vadd.f32 %v779_v46, %v778_v28 }
 0x5d0   :  { %v2391_v50 = vadd.f32 %v780_v48, %v2347_v26  ;;  %v2394_v32 = vadd.f32 %v781_v57, %v2344_v39  ;;  %v2397_v51 = vadd.f32 %v782_v30, %v2350_v40  ;;  %v2402_v53 = vadd.f32 %v783_v49, %v2356_v44 }
 0x5d2   :  { %v788_v52 = vadd.f32 %v2394_v32, %v2391_v50 }
 0x5d4   :  { %v789_v8 = vadd.f32 %v788_v52, %v2397_v51 }
 0x5d6   :  { %v790_v47 = vadd.f32 %v789_v8, %v2402_v53 }
 0x5d8   :  { %v791_v58 = vrot.slane %v790_v47, 4 }
 0x5da   :  { %v792_v0 = vadd.f32 %v791_v58, %v790_v47 }
 0x5dc   :  { %v793_v26 = vrot.slane %v792_v0, 2 }
 0x5de   :  { %v794_v1 = vadd.f32 %v793_v26, %v792_v0 }
 0x5e0   :  { %v795_v10 = vrot.slane %v794_v1, 1 }
 0x5e2   :  { %v796_v39 = vadd.f32 %v795_v10, %v794_v1 }
 0x5e4   :  { %813 = vmatmul.f32.vlgmr.msra.gmra.mxu1 %v796_v39 }
 0x661   :  { %v814_v62 = vpop.f32.mrf.mxu1 }
 0x662   :  { %v817_v40 = vperm.slane %v814_v62, 0 }
 0x664   :  { %v818_v33 = vsub.f32 %v2391_v50, %v817_v40  ;;  %v819_v23 = vsub.f32 %v2394_v32, %v817_v40  ;;  %v820_v44 = vsub.f32 %v2397_v51, %v817_v40  ;;  %v821_v12 = vsub.f32 %v2402_v53, %v817_v40 }
 0x666   :  { %v822_v34 = vmul.f32 %v818_v33, %v818_v33  ;;  %v823_v21 = vmul.f32 %v819_v23, %v819_v23  ;;  %v824_v16 = vmul.f32 %v820_v44, %v820_v44  ;;  %v825_v27 = vmul.f32 %v821_v12, %v821_v12  ;;  %v1580_v23 = vld [vmem:[%s2601_s3 + $0x48] sm:$0xff]  ;;  %v1581_v44 = vld [vmem:[%s2601_s3 + $0x50] sm:$0xff]  ;;  %v1582_v12 = vld [vmem:[%s2601_s3 + $0x58] sm:$0xff] }
 0x668   :  { %v826_v24 = vadd.f32 %v823_v21, %v822_v34  ;;  %v1583_v34 = vld [vmem:[%s2601_s3 + $0x60] sm:$0xff]  ;;  %v1584_v21 = vld [vmem:[%s2601_s3 + $0x68] sm:$0xff] }
 0x66a   :  { %v827_v35 = vadd.f32 %v826_v24, %v824_v16  ;;  %v2440_v16 = vpop.permute.xlu2 %999  ;;  %v2442_v24 = vpop.permute.xlu1 %989 }
 0x66c   :  { %v828_v54 = vadd.f32 %v827_v35, %v825_v27  ;;  %v1585_v27 = vld [vmem:[%s2601_s3 + $0x70] sm:$0xff] }
 0x66e   :  { %v829_v15 = vrot.slane %v828_v54, 4 }
 0x670   :  { %v830_v19 = vadd.f32 %v829_v15, %v828_v54  ;;  %v1586_v15 = vld [vmem:[%s2601_s3 + $0x78] sm:$0xff] }
 0x672   :  { %v831_v22 = vrot.slane %v830_v19, 2  ;;  %v2448_v35 = vpop.permute.xlu2 %994  ;;  %v2450_v54 = vpop.permute.xlu1 %984 }
 0x674   :  { %v832_v31 = vadd.f32 %v831_v22, %v830_v19 }
 0x676   :  { %v833_v36 = vrot.slane %v832_v31, 1 }
 0x678   :  { %v834_v55 = vadd.f32 %v833_v36, %v832_v31  ;;  %v2460_v31 = vpop.permute.xlu0 %1004 }
 0x67a   :  { %851 = vmatmul.f32.vlgmr.msrb.gmra.mxu2 %v834_v55  ;;  %v2455_v19 = vpop.permute.xlu2 %969  ;;  %v2457_v22 = vpop.permute.xlu1 %959 }
 0x682   :  { %v2462_v36 = vpop.permute.xlu2 %964  ;;  %v955_v55 = vpop.permute.xlu1 %954 }
 0x6fd   :  { %v852_v11 = vpop.f32.mrf.mxu2 }
 0x6fe   :  { %v853_v60 = vadd.f32 1e-05, %v852_v11  ;;  %v2464_v11 = vpop.permute.xlu0 %979 }
 0x700   :  { %1631 = vrsqrt.f32 %v853_v60  ;;  %vm861_vm11 = vweird.f32 %v853_v60 }
 0x706   :  { %v1632_v42 = vpop.eup %1631 }
 0x707   :  { %v856_v20 = vmul.f32 %v1632_v42, %v853_v60  ;;  %vm862_vm10 = vweird.f32 %v1632_v42  ;;  %v940_v60 = vpop.permute.xlu2 %939 }
 0x708   :  { %vm863_vm12 = vmor %vm861_vm11, %vm862_vm10 }
 0x709   :  { %v857_v43 = vmul.f32 %v1632_v42, %v856_v20 }
 0x70b   :  { %v858_v18 = vmul.f32 0.5, %v857_v43 }
 0x70d   :  { %v859_v25 = vsub.f32 1.5, %v858_v18 }
 0x70f   :  { %v860_v29 = vmul.f32 %v1632_v42, %v859_v25  ;;  %v2466_v25 = vpop.permute.xlu0 %974 }
 0x711   :  { %v864_v45 = vsel %vm863_vm12, %v1632_v42, %v860_v29  ;;  %v930_v42 = vpop.permute.xlu1 %929 }
 0x712   :  { %v866_v46 = vrot.slane %v864_v45, 2 }
 0x714   :  { %v868_v28 = vmul.f32 %v2382_v38, %v866_v46  ;;  %v935_v46 = vpop.permute.xlu2 %934 }
 0x716   :  { %v870_v48 = vrot.slane %v868_v28, 6  ;;  %v877_v30 = vperm.slane %v868_v28, 6 }
 0x718   :  { %v872_v57 = vmul.f32 %v870_v48, %v814_v62  ;;  %v880_v8 = vmul.f32 %v877_v30, %v2397_v51  ;;  %v881_v47 = vmul.f32 %v877_v30, %v2402_v53  ;;  %v878_v1 = vmul.f32 %v877_v30, %v2391_v50 }
 0x719   :  { %v879_v10 = vmul.f32 %v877_v30, %v2394_v32 }
 0x71a   :  { %v874_v49 = vrot.slane %v872_v57, 1 }
 0x71c   :  { %v876_v52 = vsub.f32 %v2382_v38, %v874_v49  ;;  %v1579_v38 = vld [vmem:[%s2601_s3 + $0x40] sm:$0xff] }
 0x71e   :  { %v882_v58 = vperm.slane %v876_v52, 7 }
 0x720   :  { %v885_v0 = vadd.f32 %v882_v58, %v880_v8  ;;  %v886_v26 = vadd.f32 %v882_v58, %v881_v47  ;;  %v883_v40 = vadd.f32 %v882_v58, %v878_v1  ;;  %v884_v33 = vadd.f32 %v882_v58, %v879_v10  ;;  %v950_v8 = vpop.permute.xlu0 %949 }
 0x722   :  { %v926_v39 = vpack.c.bf16 %v886_v26, %v885_v0  ;;  %v925_v62 = vpack.c.bf16 %v884_v33, %v883_v40 }
 0x724   :  { %1077 = vmatpush.bf16.msrb.mxu3 %v926_v39 }
 0x728   :  { %1078 = vmatpush.bf16.msrb.mxu3 %v925_v62  ;;  %v945_v62 = vpop.permute.xlu0 %944 }
 0x72b   :  { %1549 = vmatmul.msk.bf16.vlgmr.msrb.gmra.mxu3 %vm400_vm6, %v1579_v38 }
 0x73b   :  { %1550 = vmatmul.msk.bf16.gmra.mxu3 %vm400_vm6, %v1580_v23 }
 0x74b   :  { %1551 = vmatmul.msk.bf16.gmra.mxu3 %vm400_vm6, %v1581_v44 }
 0x75b   :  { %1552 = vmatmul.msk.bf16.gmra.mxu3 %vm400_vm6, %v1582_v12 }
 0x76b   :  { %1553 = vmatmul.msk.bf16.gmra.mxu3 %vm400_vm6, %v1583_v34 }
 0x77b   :  { %1554 = vmatmul.msk.bf16.gmra.mxu3 %vm400_vm6, %v1584_v21 }
 0x78b   :  { %1555 = vmatmul.msk.bf16.gmra.mxu3 %vm400_vm6, %v1585_v27 }
 0x79b   :  { %1556 = vmatmul.msk.bf16.gmra.mxu3 %vm400_vm6, %v1586_v15 }
 0x7ae   :  { %v1080_v20 = vpop.f32.mrf.mxu3 }
 0x7af   :  { %v1081_v43 = vadd.f32 %v1080_v20, %v930_v42 }
 0x7b1   :  { %v1136_v18 = vmul.f32 0.044715, %v1081_v43  ;;  %v1120_v27 = vmul.f32 0.5, %v1081_v43 }
 0x7b3   :  { %v1152_v29 = vmul.f32 %v1136_v18, %v1081_v43 }
 0x7b5   :  { %v1168_v45 = vmul.f32 %v1152_v29, %v1081_v43 }
 0x7b6   :  { %v1082_v28 = vpop.f32.mrf.mxu3 }
 0x7b7   :  { %v1083_v48 = vadd.f32 %v1082_v28, %v935_v46  ;;  %v1184_v57 = vadd.f32 %v1168_v45, %v1081_v43 }
 0x7b9   :  { %v1137_v30 = vmul.f32 0.044715, %v1083_v48  ;;  %v1200_v52 = vmul.f32 0.7978846, %v1184_v57  ;;  %v1121_v15 = vmul.f32 0.5, %v1083_v48 }
 0x7bb   :  { %v1153_v49 = vmul.f32 %v1137_v30, %v1083_v48  ;;  %1633 = vtanh.f32 %v1200_v52 }
 0x7bd   :  { %v1169_v47 = vmul.f32 %v1153_v49, %v1083_v48 }
 0x7be   :  { %v1085_v58 = vpop.f32.mrf.mxu3 }
 0x7bf   :  { %v1086_v0 = vadd.f32 %v1085_v58, %v940_v60  ;;  %v1185_v26 = vadd.f32 %v1169_v47, %v1083_v48 }
 0x7c1   :  { %v1138_v1 = vmul.f32 0.044715, %v1086_v0  ;;  %v1201_v10 = vmul.f32 0.7978846, %v1185_v26  ;;  %v1634_v40 = vpop.eup %1633 }
 0x7c2   :  { %v1232_v12 = vadd.f32 1.0, %v1634_v40 }
 0x7c3   :  { %v1154_v39 = vmul.f32 %v1138_v1, %v1086_v0  ;;  %1635 = vtanh.f32 %v1201_v10 }
 0x7c4   :  { %v2468_v18 = vmul.f32 %v1232_v12, %v1120_v27 }
 0x7c5   :  { %v1170_v33 = vmul.f32 %v1154_v39, %v1086_v0 }
 0x7c6   :  { %v1087_v38 = vpop.f32.mrf.mxu3 }
 0x7c7   :  { %v1088_v23 = vadd.f32 %v1087_v38, %v945_v62  ;;  %v1186_v44 = vadd.f32 %v1170_v33, %v1086_v0  ;;  %v1122_v33 = vmul.f32 0.5, %v1086_v0 }
 0x7c9   :  { %v1636_v34 = vpop.eup %1635  ;;  %v1139_v21 = vmul.f32 0.044715, %v1088_v23  ;;  %v1202_v60 = vmul.f32 0.7978846, %v1186_v44  ;;  %v1123_v62 = vmul.f32 0.5, %v1088_v23 }
 0x7ca   :  { %v1233_v42 = vadd.f32 1.0, %v1636_v34 }
 0x7cb   :  { %v1155_v20 = vmul.f32 %v1139_v21, %v1088_v23  ;;  %1637 = vtanh.f32 %v1202_v60 }
 0x7cc   :  { %v2470_v29 = vmul.f32 %v1233_v42, %v1121_v15 }
 0x7cd   :  { %v1171_v45 = vmul.f32 %v1155_v20, %v1088_v23 }
 0x7ce   :  { %v1090_v46 = vpop.f32.mrf.mxu3  ;;  %v1269_v28 = vpack.c.bf16 %v2470_v29, %v2468_v18  ;;  %v1588_v18 = vld [vmem:[%s2602_s4 + $0x18] sm:$0xff] }
 0x7cf   :  { %v1091_v57 = vadd.f32 %v1090_v46, %v950_v8  ;;  %v1187_v30 = vadd.f32 %v1171_v45, %v1088_v23 }
 0x7d1   :  { %v1140_v49 = vmul.f32 0.044715, %v1091_v57  ;;  %v1203_v52 = vmul.f32 0.7978846, %v1187_v30  ;;  %v1638_v43 = vpop.eup %1637 }
 0x7d2   :  { %v1234_v10 = vadd.f32 1.0, %v1638_v43 }
 0x7d3   :  { %v1156_v47 = vmul.f32 %v1140_v49, %v1091_v57  ;;  %1639 = vtanh.f32 %v1203_v52 }
 0x7d4   :  { %v2474_v8 = vmul.f32 %v1234_v10, %v1122_v33 }
 0x7d5   :  { %v1172_v48 = vmul.f32 %v1156_v47, %v1091_v57 }
 0x7d6   :  { %v1092_v58 = vpop.f32.mrf.mxu3 }
 0x7d7   :  { %v1093_v26 = vadd.f32 %v1092_v58, %v955_v55  ;;  %v1188_v1 = vadd.f32 %v1172_v48, %v1091_v57  ;;  %v1124_v48 = vmul.f32 0.5, %v1091_v57 }
 0x7d9   :  { %v1640_v39 = vpop.eup %1639  ;;  %v1141_v40 = vmul.f32 0.044715, %v1093_v26  ;;  %v1204_v12 = vmul.f32 0.7978846, %v1188_v1  ;;  %v1125_v58 = vmul.f32 0.5, %v1093_v26 }
 0x7da   :  { %v1235_v38 = vadd.f32 1.0, %v1640_v39 }
 0x7db   :  { %v1157_v44 = vmul.f32 %v1141_v40, %v1093_v26  ;;  %1641 = vtanh.f32 %v1204_v12 }
 0x7dc   :  { %v2476_v34 = vmul.f32 %v1235_v38, %v1123_v62 }
 0x7dd   :  { %v1173_v21 = vmul.f32 %v1157_v44, %v1093_v26 }
 0x7de   :  { %v1095_v27 = vpop.f32.mrf.mxu3  ;;  %v1270_v15 = vpack.c.bf16 %v2476_v34, %v2474_v8 }
 0x7df   :  { %v1096_v55 = vadd.f32 %v1095_v27, %v2457_v22  ;;  %v1189_v42 = vadd.f32 %v1173_v21, %v1093_v26 }
 0x7e1   :  { %v1142_v20 = vmul.f32 0.044715, %v1096_v55  ;;  %v1205_v60 = vmul.f32 0.7978846, %v1189_v42  ;;  %v1642_v23 = vpop.eup %1641  ;;  %v1126_v27 = vmul.f32 0.5, %v1096_v55 }
 0x7e2   :  { %v1236_v52 = vadd.f32 1.0, %v1642_v23 }
 0x7e3   :  { %v1158_v0 = vmul.f32 %v1142_v20, %v1096_v55  ;;  %1643 = vtanh.f32 %v1205_v60 }
 0x7e4   :  { %v2482_v39 = vmul.f32 %v1236_v52, %v1124_v48 }
 0x7e5   :  { %v1174_v45 = vmul.f32 %v1158_v0, %v1096_v55 }
 0x7e6   :  { %v1097_v46 = vpop.f32.mrf.mxu3 }
 0x7e7   :  { %v1098_v30 = vadd.f32 %v1097_v46, %v2462_v36  ;;  %v1190_v49 = vadd.f32 %v1174_v45, %v1096_v55 }
 0x7e9   :  { %v1644_v47 = vpop.eup %1643  ;;  %v1143_v43 = vmul.f32 0.044715, %v1098_v30  ;;  %v1206_v22 = vmul.f32 0.7978846, %v1190_v49  ;;  %v1127_v42 = vmul.f32 0.5, %v1098_v30 }
 0x7ea   :  { %v1237_v1 = vadd.f32 1.0, %v1644_v47 }
 0x7eb   :  { %v1159_v10 = vmul.f32 %v1143_v43, %v1098_v30  ;;  %1645 = vtanh.f32 %v1206_v22 }
 0x7ec   :  { %v2484_v40 = vmul.f32 %v1237_v1, %v1125_v58 }
 0x7ed   :  { %v1175_v33 = vmul.f32 %v1159_v10, %v1098_v30 }
 0x7ee   :  { %v1100_v62 = vpop.f32.mrf.mxu3  ;;  %v1271_v38 = vpack.c.bf16 %v2484_v40, %v2482_v39 }
 0x7ef   :  { %v1191_v44 = vadd.f32 %v1175_v33, %v1098_v30 }
 0x7f1   :  { %v1207_v36 = vmul.f32 0.7978846, %v1191_v44  ;;  %v1646_v12 = vpop.eup %1645  ;;  %v2516_v44 = vadd.f32 %v1100_v62, %v2455_v19 }
 0x7f2   :  { %v1238_v57 = vadd.f32 1.0, %v1646_v12 }
 0x7f3   :  { %1647 = vtanh.f32 %v1207_v36 }
 0x7f4   :  { %v2488_v60 = vmul.f32 %v1238_v57, %v1126_v27  ;;  %v1144_v27 = vmul.f32 0.044715, %v2516_v44 }
 0x7f6   :  { %v1102_v21 = vpop.f32.mrf.mxu3 }
 0x7f7   :  { %v2510_v22 = vadd.f32 %v1102_v21, %v2466_v25 }
 0x7f9   :  { %v1648_v26 = vpop.eup %1647 }
 0x7fa   :  { %v1239_v20 = vadd.f32 1.0, %v1648_v26 }
 0x7fc   :  { %v2490_v0 = vmul.f32 %v1239_v20, %v1127_v42 }
 0x7fe   :  { %v1105_v23 = vpop.f32.mrf.mxu3  ;;  %v1272_v45 = vpack.c.bf16 %v2490_v0, %v2488_v60 }
 0x7ff   :  { %v2506_v1 = vadd.f32 %v1105_v23, %v2464_v11  ;;  %v1145_v11 = vmul.f32 0.044715, %v2510_v22 }
 0x801   :  { %v1146_v36 = vmul.f32 0.044715, %v2506_v1  ;;  %v1161_v62 = vmul.f32 %v1145_v11, %v2510_v22 }
 0x803   :  { %v1162_v42 = vmul.f32 %v1146_v36, %v2506_v1 }
 0x806   :  { %v1107_v46 = vpop.f32.mrf.mxu3 }
 0x807   :  { %v2501_v55 = vadd.f32 %v1107_v46, %v2450_v54 }
 0x80e   :  { %v1110_v49 = vpop.f32.mrf.mxu3 }
 0x80f   :  { %v2498_v43 = vadd.f32 %v1110_v49, %v2442_v24 }
 0x811   :  { %v1148_v48 = vmul.f32 0.044715, %v2498_v43 }
 0x813   :  { %v1164_v54 = vmul.f32 %v1148_v48, %v2498_v43 }
 0x815   :  { %v1180_v26 = vmul.f32 %v1164_v54, %v2498_v43 }
 0x816   :  { %v1112_v52 = vpop.f32.mrf.mxu3 }
 0x817   :  { %v2495_v47 = vadd.f32 %v1112_v52, %v2448_v35  ;;  %v1147_v35 = vmul.f32 0.044715, %v2501_v55  ;;  %v1196_v52 = vadd.f32 %v1180_v26, %v2498_v43 }
 0x819   :  { %v1149_v30 = vmul.f32 0.044715, %v2495_v47  ;;  %v1212_v36 = vmul.f32 0.7978846, %v1196_v52 }
 0x81b   :  { %v1165_v24 = vmul.f32 %v1149_v30, %v2495_v47  ;;  %v1160_v30 = vmul.f32 %v1144_v27, %v2516_v44 }
 0x81d   :  { %v1181_v25 = vmul.f32 %v1165_v24, %v2495_v47 }
 0x81e   :  { %v1115_v58 = vpop.f32.mrf.mxu3 }
 0x81f   :  { %v1116_v10 = vadd.f32 %v1115_v58, %v2440_v16  ;;  %v1163_v16 = vmul.f32 %v1147_v35, %v2501_v55  ;;  %v1197_v46 = vadd.f32 %v1181_v25, %v2495_v47  ;;  %v1178_v35 = vmul.f32 %v1162_v42, %v2506_v1 }
 0x821   :  { %v1150_v33 = vmul.f32 0.044715, %v1116_v10  ;;  %v1179_v49 = vmul.f32 %v1163_v16, %v2501_v55  ;;  %v1194_v11 = vadd.f32 %v1178_v35, %v2506_v1  ;;  %v1176_v16 = vmul.f32 %v1160_v30, %v2516_v44 }
 0x822   :  { %v1134_v30 = vmul.f32 0.5, %v1116_v10 }
 0x823   :  { %v1166_v12 = vmul.f32 %v1150_v33, %v1116_v10  ;;  %v1213_v33 = vmul.f32 0.7978846, %v1197_v46  ;;  %v1195_v54 = vadd.f32 %v1179_v49, %v2501_v55  ;;  %v1210_v26 = vmul.f32 0.7978846, %v1194_v11 }
 0x824   :  { %v1192_v27 = vadd.f32 %v1176_v16, %v2516_v44  ;;  %v1132_v16 = vmul.f32 0.5, %v2498_v43 }
 0x825   :  { %v1182_v57 = vmul.f32 %v1166_v12, %v1116_v10  ;;  %v1211_v25 = vmul.f32 0.7978846, %v1195_v54 }
 0x826   :  { %v1117_v21 = vpop.f32.mrf.mxu3 }
 0x827   :  { %v1198_v20 = vadd.f32 %v1182_v57, %v1116_v10  ;;  %v1118_v19 = vadd.f32 %v1117_v21, %v2460_v31  ;;  %v1177_v31 = vmul.f32 %v1161_v62, %v2510_v22  ;;  %v1131_v10 = vmul.f32 0.5, %v2501_v55  ;;  %v1587_v55 = vld [vmem:[%s2602_s4 + $0x10] sm:$0xff] }
 0x829   :  { %v1151_v23 = vmul.f32 0.044715, %v1118_v19  ;;  %v1214_v48 = vmul.f32 0.7978846, %v1198_v20  ;;  %v1193_v21 = vadd.f32 %v1177_v31, %v2510_v22  ;;  %v1133_v31 = vmul.f32 0.5, %v2495_v47 }
 0x82b   :  { %v1167_v58 = vmul.f32 %v1151_v23, %v1118_v19  ;;  %1649 = vtanh.f32 %v1214_v48  ;;  %v1209_v20 = vmul.f32 0.7978846, %v1193_v21  ;;  %v1208_v23 = vmul.f32 0.7978846, %v1192_v27 }
 0x82c   :  { %1651 = vtanh.f32 %v1213_v33  ;;  %v1135_v48 = vmul.f32 0.5, %v1118_v19 }
 0x82d   :  { %v1183_v24 = vmul.f32 %v1167_v58, %v1118_v19  ;;  %1653 = vtanh.f32 %v1212_v36 }
 0x82f   :  { %v1199_v12 = vadd.f32 %v1183_v24, %v1118_v19 }
 0x831   :  { %v1215_v57 = vmul.f32 0.7978846, %v1199_v12  ;;  %v1650_v42 = vpop.eup %1649 }
 0x832   :  { %v1652_v62 = vpop.eup %1651  ;;  %v1246_v49 = vadd.f32 1.0, %v1650_v42 }
 0x833   :  { %1655 = vtanh.f32 %v1215_v57  ;;  %v1654_v46 = vpop.eup %1653  ;;  %v1245_v35 = vadd.f32 1.0, %v1652_v62 }
 0x834   :  { %1657 = vtanh.f32 %v1211_v25  ;;  %v1262_v33 = vmul.f32 %v1246_v49, %v1134_v30  ;;  %v1244_v36 = vadd.f32 1.0, %v1654_v46  ;;  %v1129_v46 = vmul.f32 0.5, %v2510_v22 }
 0x835   :  { %1659 = vtanh.f32 %v1210_v26  ;;  %v1261_v57 = vmul.f32 %v1245_v35, %v1133_v31 }
 0x836   :  { %1661 = vtanh.f32 %v1209_v20  ;;  %v1260_v26 = vmul.f32 %v1244_v36, %v1132_v16  ;;  %v1130_v20 = vmul.f32 0.5, %v2506_v1 }
 0x837   :  { %1663 = vtanh.f32 %v1208_v23 }
 0x838   :  { %v1275_v42 = vpack.c.bf16 %v1261_v57, %v1260_v26 }
 0x839   :  { %v1656_v52 = vpop.eup %1655 }
 0x83a   :  { %v1247_v58 = vadd.f32 1.0, %v1656_v52  ;;  %v1658_v24 = vpop.eup %1657  ;;  %v1128_v52 = vmul.f32 0.5, %v2516_v44 }
 0x83b   :  { %v1660_v12 = vpop.eup %1659  ;;  %v1243_v25 = vadd.f32 1.0, %v1658_v24 }
 0x83c   :  { %v1263_v54 = vmul.f32 %v1247_v58, %v1135_v48  ;;  %v1662_v21 = vpop.eup %1661  ;;  %v1242_v19 = vadd.f32 1.0, %v1660_v12 }
 0x83d   :  { %v1664_v27 = vpop.eup %1663  ;;  %v1259_v62 = vmul.f32 %v1243_v25, %v1131_v10  ;;  %v1241_v23 = vadd.f32 1.0, %v1662_v21 }
 0x83e   :  { %v1276_v11 = vpack.c.bf16 %v1263_v54, %v1262_v33  ;;  %v1258_v47 = vmul.f32 %v1242_v19, %v1130_v20  ;;  %v1240_v49 = vadd.f32 1.0, %v1664_v27  ;;  %v25_v20 = vld [vmem:[%s2599_s1 + $0x8] sm:$0x3] }
 0x83f   :  { %v1257_v30 = vmul.f32 %v1241_v23, %v1129_v46 }
 0x840   :  { %1309 = vmatpush.bf16.msrb.mxu1 %v1276_v11  ;;  %v1274_v43 = vpack.c.bf16 %v1259_v62, %v1258_v47  ;;  %v1256_v48 = vmul.f32 %v1240_v49, %v1128_v52 }
 0x842   :  { %v1273_v58 = vpack.c.bf16 %v1257_v30, %v1256_v48 }
 0x844   :  { %1310 = vmatpush.bf16.msrb.mxu1 %v1275_v42 }
 0x848   :  { %1311 = vmatpush.bf16.msrb.mxu1 %v1274_v43 }
 0x84c   :  { %1312 = vmatpush.bf16.msrb.mxu1 %v1273_v58 }
 0x850   :  { %1313 = vmatpush.bf16.msrb.mxu1 %v1272_v45 }
 0x854   :  { %1314 = vmatpush.bf16.msrb.mxu1 %v1271_v38 }
 0x858   :  { %1315 = vmatpush.bf16.msrb.mxu1 %v1270_v15 }
 0x85c   :  { %1316 = vmatpush.bf16.msrb.mxu1 %v1269_v28 }
 0x85f   :  { %1317 = vmatmul.bf16.vlgmr.msrb.gmra.mxu1 %v1587_v55 }
 0x860   :  { %1379 = vmatpush.msra.mxu1 %v2247_v63 }
 0x862   :  { %1380 = vmatpush.msra.mxu1 %v2253_v4 }
 0x864   :  { %1381 = vmatpush.msra.mxu1 %v2259_v3  ;;  %v1280_v3 = vpop.permute.xlu0 %1279 }
 0x866   :  { %1382 = vmatpush.msra.mxu1 %v2265_v6  ;;  %v1285_v6 = vpop.permute.xlu1 %1284 }
 0x868   :  { %1383 = vmatpush.msra.mxu1 %v2271_v14 }
 0x86a   :  { %1384 = vmatpush.msra.mxu1 %v2277_v37 }
 0x86c   :  { %1385 = vmatpush.msra.mxu1 %v2283_v7  ;;  %v1290_v7 = vpop.permute.xlu2 %1289 }
 0x86e   :  { %1386 = vmatpush.msra.mxu1 %v2292_v56 }
 0x86f   :  { %1322 = vmatmul.bf16.gmra.mxu1 %v1588_v18 }
 0x870   :  { %1387 = vmatpush.msra.mxu1 %v2298_v2 }
 0x872   :  { %1388 = vmatpush.msra.mxu1 %v2304_v13 }
 0x874   :  { %1389 = vmatpush.msra.mxu1 %v2310_v17 }
 0x876   :  { %1390 = vmatpush.msra.mxu1 %v2316_v5 }
 0x878   :  { %1391 = vmatpush.msra.mxu1 %v2322_v9  ;;  %v1295_v9 = vpop.permute.xlu0 %1294 }
 0x87a   :  { %1392 = vmatpush.msra.mxu1 %v2328_v41 }
 0x87c   :  { %1393 = vmatpush.msra.mxu1 %v2334_v59 }
 0x87e   :  { %1394 = vmatpush.msra.mxu1 %v2340_v61 }
 0x8dc   :  { %v1318_v63 = vpop.f32.mrf.mxu1 }
 0x8dd   :  { %v1319_v56 = vadd.f32 %v1318_v63, %v1280_v3 }
 0x8df   :  { %v1328_v17 = vadd.f32 %v1319_v56, %v2391_v50 }
 0x8e4   :  { %v1320_v4 = vpop.f32.mrf.mxu1 }
 0x8e5   :  { %v1321_v37 = vadd.f32 %v1320_v4, %v1285_v6 }
 0x8e7   :  { %v1329_v13 = vadd.f32 %v1321_v37, %v2394_v32 }
 0x8e9   :  { %v1332_v59 = vadd.f32 %v1329_v13, %v1328_v17 }
 0x8ec   :  { %v1323_v14 = vpop.f32.mrf.mxu1 }
 0x8ed   :  { %v1324_v2 = vadd.f32 %v1323_v14, %v1290_v7 }
 0x8ef   :  { %v1330_v5 = vadd.f32 %v1324_v2, %v2397_v51 }
 0x8f1   :  { %v1333_v61 = vadd.f32 %v1332_v59, %v1330_v5 }
 0x8f4   :  { %v1325_v41 = vpop.f32.mrf.mxu1 }
 0x8f5   :  { %v1326_v29 = vadd.f32 %v1325_v41, %v1295_v9 }
 0x8f7   :  { %v1331_v28 = vadd.f32 %v1326_v29, %v2402_v53 }
 0x8f9   :  { %v1334_v8 = vadd.f32 %v1333_v61, %v1331_v28 }
 0x8fb   :  { %v1335_v34 = vrot.slane %v1334_v8, 4 }
 0x8fd   :  { %v1336_v15 = vadd.f32 %v1335_v34, %v1334_v8 }
 0x8ff   :  { %v1337_v39 = vrot.slane %v1336_v15, 2 }
 0x901   :  { %v1338_v40 = vadd.f32 %v1337_v39, %v1336_v15 }
 0x903   :  { %v1339_v38 = vrot.slane %v1338_v40, 1 }
 0x905   :  { %v1340_v60 = vadd.f32 %v1339_v38, %v1338_v40 }
 0x907   :  { %1357 = vmatmul.f32.vlgmr.msra.gmra.mxu2 %v1340_v60 }
 0x98a   :  { %v1358_v32 = vpop.f32.mrf.mxu2 }
 0x98b   :  { %v1361_v0 = vperm.slane %v1358_v32, 0 }
 0x98d   :  { %v1362_v50 = vsub.f32 %v1328_v17, %v1361_v0  ;;  %v1363_v45 = vsub.f32 %v1329_v13, %v1361_v0  ;;  %v1364_v51 = vsub.f32 %v1330_v5, %v1361_v0  ;;  %v1365_v1 = vsub.f32 %v1331_v28, %v1361_v0 }
 0x98f   :  { %v1366_v22 = vmul.f32 %v1362_v50, %v1362_v50  ;;  %v1367_v44 = vmul.f32 %v1363_v45, %v1363_v45  ;;  %v1368_v35 = vmul.f32 %v1364_v51, %v1364_v51  ;;  %v1369_v33 = vmul.f32 %v1365_v1, %v1365_v1 }
 0x991   :  { %v1370_v24 = vadd.f32 %v1367_v44, %v1366_v22 }
 0x993   :  { %v1371_v53 = vadd.f32 %v1370_v24, %v1368_v35 }
 0x995   :  { %v1372_v54 = vadd.f32 %v1371_v53, %v1369_v33 }
 0x997   :  { %v1373_v31 = vrot.slane %v1372_v54, 4 }
 0x999   :  { %v1374_v36 = vadd.f32 %v1373_v31, %v1372_v54 }
 0x99b   :  { %v1375_v12 = vrot.slane %v1374_v36, 2 }
 0x99d   :  { %v1376_v11 = vadd.f32 %v1375_v12, %v1374_v36 }
 0x99f   :  { %v1377_v16 = vrot.slane %v1376_v11, 1 }
 0x9a1   :  { %v1378_v57 = vadd.f32 %v1377_v16, %v1376_v11 }
 0x9a3   :  { %1395 = vmatmul.f32.vlgmr.msra.gmra.mxu1 %v1378_v57 }
 0xa20   :  { %v1396_v25 = vpop.f32.mrf.mxu1 }
 0xa21   :  { %v1397_v21 = vadd.f32 1e-05, %v1396_v25 }
 0xa23   :  { %1665 = vrsqrt.f32 %v1397_v21  ;;  %vm1405_vm14 = vweird.f32 %v1397_v21 }
 0xa29   :  { %v1666_v26 = vpop.eup %1665 }
 0xa2a   :  { %v1400_v10 = vmul.f32 %v1666_v26, %v1397_v21  ;;  %vm1406_vm13 = vweird.f32 %v1666_v26 }
 0xa2b   :  { %vm1407_vm15 = vmor %vm1405_vm14, %vm1406_vm13 }
 0xa2c   :  { %v1401_v19 = vmul.f32 %v1666_v26, %v1400_v10 }
 0xa2e   :  { %v1402_v27 = vmul.f32 0.5, %v1401_v19 }
 0xa30   :  { %v1403_v42 = vsub.f32 1.5, %v1402_v27 }
 0xa32   :  { %v1404_v62 = vmul.f32 %v1666_v26, %v1403_v42 }
 0xa34   :  { %v1408_v23 = vsel %vm1407_vm15, %v1666_v26, %v1404_v62 }
 0xa35   :  { %v1409_v47 = vmul.f32 %v1408_v23, %v25_v20 }
 0xa37   :  { %v1410_v46 = vmul.f32 %v1409_v47, %v1358_v32  ;;  %v1415_v43 = vperm.slane %v1409_v47, 0 }
 0xa39   :  { %v1412_v49 = vrot.slane %v1410_v46, 7  ;;  %v1416_v30 = vmul.f32 %v1415_v43, %v1328_v17  ;;  %v1417_v48 = vmul.f32 %v1415_v43, %v1329_v13  ;;  %v1418_v58 = vmul.f32 %v1415_v43, %v1330_v5 }
 0xa3a   :  { %v1419_v18 = vmul.f32 %v1415_v43, %v1331_v28 }
 0xa3b   :  { %v1414_v52 = vsub.f32 %v25_v20, %v1412_v49 }
 0xa3d   :  { %v1420_v55 = vperm.slane %v1414_v52, 1 }
 0xa3f   :  { %v1421_v63 = vadd.f32 %v1420_v55, %v1416_v30  ;;  %v1422_v4 = vadd.f32 %v1420_v55, %v1417_v48  ;;  %v1423_v3 = vadd.f32 %v1420_v55, %v1418_v58  ;;  %v1424_v6 = vadd.f32 %v1420_v55, %v1419_v18 }
 0xa41   :  { %1425 = vst [vmem:[%s2603_s6] sm:$0xff] %v1421_v63 }
 0xa42   :  { %1426 = vst [vmem:[%s2603_s6 + $0x8] sm:$0xff] %v1422_v4 }
 0xa43   :  { %1427 = vst [vmem:[%s2603_s6 + $0x10] sm:$0xff] %v1423_v3 }
 0xa44   :  { %1428 = vst [vmem:[%s2603_s6 + $0x18] sm:$0xff] %v1424_v6 }

</bundles_post_ra>
